<compile_context>
chip_gen: v7x
topology: tpu7x:2x2x1
jax: 0.10.0
libtpu: 0.0.40
codegen_flags: <defaults>
</compile_context>

<pallas_src>
import functools

import jax
import jax.numpy as jnp
from jax.experimental import pallas as pl
from jax.experimental.pallas import tpu as pltpu


def _pick_row_tile(H, W, target_rows=2048):
    """Pick th | H with th*W % 128 == 0 (lane-dense output block) and th*W <= target.

    Prefer leaving >= 2 row tiles so the grid has several parallel steps (v7x has
    2 TensorCores); fall back to th = H, which is always legal because the output
    block then spans the full H*W axis.
    """
    divs = [t for t in range(1, H + 1) if H % t == 0]
    ok = [t for t in divs if (t * W) % 128 == 0 and t * W <= target_rows]
    if not ok:
        return H
    multi = [t for t in ok if H // t >= 2]
    return max(multi) if multi else max(ok)


def _subpixel_weight(weight):
    """(Cin, Cout, 4, 4) ConvTranspose2d weight -> (9, 4*Cout, Cin) sub-pixel kernels.

    w[a*3+b, (ry*2+rx)*Cout + co, ci] multiplies xp[n, oy+a, ox+b, ci] (xp = input
    zero-padded by 1) and accumulates into output pixel (2*oy+ry, 2*ox+rx, co).
    Derivation: oh = 2*ih - 1 + kh  =>  kh = 3 + ry - 2*a (valid iff 0 <= kh < 4).
    """
    Cin, Cout, KH, KW = weight.shape
    mats = []
    for a in range(3):
        for b in range(3):
            w_ab = jnp.zeros((2, 2, Cout, Cin), weight.dtype)
            for ry in range(2):
                kh = 3 + ry - 2 * a
                if not 0 <= kh < KH:
                    continue
                for rx in range(2):
                    kw = 3 + rx - 2 * b
                    if not 0 <= kw < KW:
                        continue
                    w_ab = w_ab.at[ry, rx].set(weight[:, :, kh, kw].T)  # (Cout, Cin)
            mats.append(w_ab.reshape(4 * Cout, Cin))
    return jnp.stack(mats, axis=0)  # (9, 4*Cout, Cin)


def _outconv_kernel(xp_ref, w_ref, b_ref, o_ref, *, th, W, Cin, C4):
    # xp_ref: (1, H+2, W+2, Cin) bf16 -- whole padded image of batch `n` (resident)
    # w_ref : (9, C4, Cin)       bf16 -- C4 = 4*Cout sub-pixel kernels
    # b_ref : (C4, 1)            f32  -- bias replicated per output phase
    # o_ref : (1, C4, th*W)      f32  -- lane axis = spatial (lane-dense stores)
    row0 = pl.program_id(1) * th
    acc = jnp.zeros((C4, th * W), jnp.float32)
    for a in range(3):          # static 3x3 shift loop -> fully unrolled
        for b in range(3):
            patch = xp_ref[0, pl.ds(row0 + a, th), pl.ds(b, W), :]   # (th, W, Cin)
            patch = patch.reshape(th * W, Cin)
            # (C4, Cin) x (th*W, Cin)^T -> (C4, th*W); bf16 MXU, f32 accumulation.
            acc = acc + jax.lax.dot_general(
                w_ref[a * 3 + b], patch,
                dimension_numbers=(((1,), (1,)), ((), ())),
                preferred_element_type=jnp.float32)
    # f32 epilogue (bias + tanh) -- keeps accuracy and avoids bf16 VPU math on v5e.
    o_ref[0] = jnp.tanh(acc + b_ref[...])


def outconv_forward(x, weight, bias, *, row_tile_target=2048):
    """ConvTranspose2d(kernel=4, stride=2, padding=1) + Tanh (PyTorch semantics).

    x: (N, Cin, H, W) f32, weight: (Cin, Cout, 4, 4), bias: (Cout,).
    Returns (N, Cout, 2H, 2W) f32.
    """
    N, Cin, H, W = x.shape
    Cin_w, Cout, KH, KW = weight.shape
    assert Cin == Cin_w and KH == 4 and KW == 4
    Ho, Wo = 2 * H, 2 * W
    C4 = 4 * Cout

    # --- cheap glue (input-sized): pad by 1, channels-last, bf16 for the MXU.
    xp = jnp.pad(x.astype(jnp.bfloat16), ((0, 0), (0, 0), (1, 1), (1, 1)))
    xp = jnp.transpose(xp, (0, 2, 3, 1))                       # (N, H+2, W+2, Cin)
    w_t = _subpixel_weight(weight).astype(jnp.bfloat16)        # (9, 4*Cout, Cin)
    b_col = jnp.tile(bias.astype(jnp.float32), 4).reshape(C4, 1)

    th = _pick_row_tile(H, W, row_tile_target)
    grid = (N, H // th)

    kernel = functools.partial(_outconv_kernel, th=th, W=W, Cin=Cin, C4=C4)
    y = pl.pallas_call(
        kernel,
        out_shape=jax.ShapeDtypeStruct((N, C4, H * W), jnp.float32),
        grid_spec=pltpu.PrefetchScalarGridSpec(
            num_scalar_prefetch=0,
            grid=grid,
            in_specs=[
                # whole padded image of batch n; same block across the row-tile axis
                pl.BlockSpec((1, H + 2, W + 2, Cin), lambda n, t: (n, 0, 0, 0)),
                pl.BlockSpec((9, C4, Cin), lambda n, t: (0, 0, 0)),
                pl.BlockSpec((C4, 1), lambda n, t: (0, 0)),
            ],
            out_specs=pl.BlockSpec((1, C4, th * W), lambda n, t: (n, 0, t)),
        ),
        compiler_params=pltpu.CompilerParams(
            dimension_semantics=("parallel", "parallel"),
            # blocks here are <1 MiB; 32 MiB is safely within scoped VMEM on
            # v5e/v6e (128 MiB physical) and v7x (64 MiB physical).
            vmem_limit_bytes=32 * 1024 * 1024,
        ),
    )(xp, w_t, b_col)

    # depth-to-space + NCHW: pure reshape/transpose on the small result in XLA.
    y = y.reshape(N, 2, 2, Cout, H, W)            # (n, ry, rx, co, oy, ox)
    y = jnp.transpose(y, (0, 3, 4, 1, 5, 2))      # (n, co, oy, ry, ox, rx)
    return y.reshape(N, Cout, Ho, Wo)


if __name__ == "__main__":
    key = jax.random.PRNGKey(0)
    kx, kw, kb = jax.random.split(key, 3)

    N, Cin, Cout, H, W = 2, 4, 3, 16, 16
    x = jax.random.normal(kx, (N, Cin, H, W), dtype=jnp.float32)
    # PyTorch ConvTranspose2d weight shape: (in_ch, out_ch, kH, kW)
    fan = Cin * 4 * 4
    bound = 1.0 / (fan ** 0.5)
    weight = jax.random.uniform(kw, (Cin, Cout, 4, 4), jnp.float32, -bound, bound)
    bias = jax.random.uniform(kb, (Cout,), jnp.float32, -bound, bound)

    out = jax.jit(outconv_forward)(x, weight, bias)
    out = jax.block_until_ready(out)
    assert out.shape == (N, Cout, 2 * H, 2 * W), out.shape

    # independent reference: lax dilated conv (== PyTorch ConvTranspose2d) + tanh
    w_conv = jnp.transpose(weight, (1, 0, 2, 3))[:, :, ::-1, ::-1]
    ref = jax.lax.conv_general_dilated(
        x, w_conv, window_strides=(1, 1), padding=((2, 2), (2, 2)),
        lhs_dilation=(2, 2), dimension_numbers=("NCHW", "OIHW", "NCHW"))
    ref = jnp.tanh(ref + bias[None, :, None, None])
    max_err = float(jnp.max(jnp.abs(out - ref)))
    # bf16 matmul inputs with f32 accumulation -> loosen tolerance vs pure-f32 v1.
    assert jnp.allclose(out, ref, atol=2e-2, rtol=2e-2), max_err

    print("KERNEL_OK")
</pallas_src>

<mosaic_0001>
module attributes {stable_mosaic.version = 11 : i64} {
  func.func @_outconv_kernel(%arg0: i32, %arg1: i32, %arg2: memref<1x18x18x4xbf16, #tpu.memory_space<vmem>>, %arg3: memref<9x12x4xbf16, #tpu.memory_space<vmem>>, %arg4: memref<12x1xf32, #tpu.memory_space<vmem>>, %arg5: memref<1x12x128xf32, #tpu.memory_space<vmem>>) attributes {dimension_semantics = [#tpu.dimension_semantics<parallel>, #tpu.dimension_semantics<parallel>], iteration_bounds = array<i64: 2, 2>, scalar_prefetch = 0 : i64, scratch_operands = 0 : i64, tpu.core_type = #tpu.core_type<tc>, window_params = [{transform_indices = @transform_0, window_bounds = array<i64: 1, 18, 18, 4>}, {pipeline_mode = #tpu.pipeline_mode<synchronous>, transform_indices = @transform_1, window_bounds = array<i64: 9, 12, 4>}, {pipeline_mode = #tpu.pipeline_mode<synchronous>, transform_indices = @transform_2, window_bounds = array<i64: 12, 1>}, {transform_indices = @transform_3, window_bounds = array<i64: 1, 12, 128>}]} {
    %c8_i32 = arith.constant 8 : i32
    %0 = arith.muli %arg1, %c8_i32 : i32
    %cst = arith.constant 0.000000e+00 : f32
    %1 = vector.broadcast %cst : f32 to vector<12x128xf32>
    %c0_i32 = arith.constant 0 : i32
    %2 = arith.addi %0, %c0_i32 : i32
    %c0 = arith.constant 0 : index
    %3 = arith.index_cast %2 : i32 to index
    %c0_0 = arith.constant 0 : index
    %c0_1 = arith.constant 0 : index
    %4 = vector.load %arg2[%c0, %3, %c0_0, %c0_1] : memref<1x18x18x4xbf16, #tpu.memory_space<vmem>>, vector<1x8x16x4xbf16>
    %5 = vector.shape_cast %4 : vector<1x8x16x4xbf16> to vector<8x16x4xbf16>
    %6 = vector.shape_cast %5 : vector<8x16x4xbf16> to vector<128x4xbf16>
    %c0_2 = arith.constant 0 : index
    %c0_3 = arith.constant 0 : index
    %c0_4 = arith.constant 0 : index
    %7 = vector.load %arg3[%c0_2, %c0_3, %c0_4] : memref<9x12x4xbf16, #tpu.memory_space<vmem>>, vector<1x12x4xbf16>
    %8 = vector.shape_cast %7 : vector<1x12x4xbf16> to vector<12x4xbf16>
    %cst_5 = arith.constant dense<0.000000e+00> : vector<12x128xf32>
    %9 = tpu.matmul %8, %6, %cst_5 {dimension_numbers = #tpu.dot_dimension_numbers<[1], [1], [0], [0], [0, 0, 1, 0], [], []>} : vector<12x4xbf16>, vector<128x4xbf16>, vector<12x128xf32> -> vector<12x128xf32>
    %10 = arith.addf %1, %9 : vector<12x128xf32>
    %c0_i32_6 = arith.constant 0 : i32
    %11 = arith.addi %0, %c0_i32_6 : i32
    %c0_7 = arith.constant 0 : index
    %12 = arith.index_cast %11 : i32 to index
    %c1 = arith.constant 1 : index
    %c0_8 = arith.constant 0 : index
    %13 = vector.load %arg2[%c0_7, %12, %c1, %c0_8] : memref<1x18x18x4xbf16, #tpu.memory_space<vmem>>, vector<1x8x16x4xbf16>
    %14 = vector.shape_cast %13 : vector<1x8x16x4xbf16> to vector<8x16x4xbf16>
    %15 = vector.shape_cast %14 : vector<8x16x4xbf16> to vector<128x4xbf16>
    %c1_9 = arith.constant 1 : index
    %c0_10 = arith.constant 0 : index
    %c0_11 = arith.constant 0 : index
    %16 = vector.load %arg3[%c1_9, %c0_10, %c0_11] : memref<9x12x4xbf16, #tpu.memory_space<vmem>>, vector<1x12x4xbf16>
    %17 = vector.shape_cast %16 : vector<1x12x4xbf16> to vector<12x4xbf16>
    %cst_12 = arith.constant dense<0.000000e+00> : vector<12x128xf32>
    %18 = tpu.matmul %17, %15, %cst_12 {dimension_numbers = #tpu.dot_dimension_numbers<[1], [1], [0], [0], [0, 0, 1, 0], [], []>} : vector<12x4xbf16>, vector<128x4xbf16>, vector<12x128xf32> -> vector<12x128xf32>
    %19 = arith.addf %10, %18 : vector<12x128xf32>
    %c0_i32_13 = arith.constant 0 : i32
    %20 = arith.addi %0, %c0_i32_13 : i32
    %c0_14 = arith.constant 0 : index
    %21 = arith.index_cast %20 : i32 to index
    %c2 = arith.constant 2 : index
    %c0_15 = arith.constant 0 : index
    %22 = vector.load %arg2[%c0_14, %21, %c2, %c0_15] : memref<1x18x18x4xbf16, #tpu.memory_space<vmem>>, vector<1x8x16x4xbf16>
    %23 = vector.shape_cast %22 : vector<1x8x16x4xbf16> to vector<8x16x4xbf16>
    %24 = vector.shape_cast %23 : vector<8x16x4xbf16> to vector<128x4xbf16>
    %c2_16 = arith.constant 2 : index
    %c0_17 = arith.constant 0 : index
    %c0_18 = arith.constant 0 : index
    %25 = vector.load %arg3[%c2_16, %c0_17, %c0_18] : memref<9x12x4xbf16, #tpu.memory_space<vmem>>, vector<1x12x4xbf16>
    %26 = vector.shape_cast %25 : vector<1x12x4xbf16> to vector<12x4xbf16>
    %cst_19 = arith.constant dense<0.000000e+00> : vector<12x128xf32>
    %27 = tpu.matmul %26, %24, %cst_19 {dimension_numbers = #tpu.dot_dimension_numbers<[1], [1], [0], [0], [0, 0, 1, 0], [], []>} : vector<12x4xbf16>, vector<128x4xbf16>, vector<12x128xf32> -> vector<12x128xf32>
    %28 = arith.addf %19, %27 : vector<12x128xf32>
    %c1_i32 = arith.constant 1 : i32
    %29 = arith.addi %0, %c1_i32 : i32
    %c0_20 = arith.constant 0 : index
    %30 = arith.index_cast %29 : i32 to index
    %c0_21 = arith.constant 0 : index
    %c0_22 = arith.constant 0 : index
    %31 = vector.load %arg2[%c0_20, %30, %c0_21, %c0_22] : memref<1x18x18x4xbf16, #tpu.memory_space<vmem>>, vector<1x8x16x4xbf16>
    %32 = vector.shape_cast %31 : vector<1x8x16x4xbf16> to vector<8x16x4xbf16>
    %33 = vector.shape_cast %32 : vector<8x16x4xbf16> to vector<128x4xbf16>
    %c3 = arith.constant 3 : index
    %c0_23 = arith.constant 0 : index
    %c0_24 = arith.constant 0 : index
    %34 = vector.load %arg3[%c3, %c0_23, %c0_24] : memref<9x12x4xbf16, #tpu.memory_space<vmem>>, vector<1x12x4xbf16>
    %35 = vector.shape_cast %34 : vector<1x12x4xbf16> to vector<12x4xbf16>
    %cst_25 = arith.constant dense<0.000000e+00> : vector<12x128xf32>
    %36 = tpu.matmul %35, %33, %cst_25 {dimension_numbers = #tpu.dot_dimension_numbers<[1], [1], [0], [0], [0, 0, 1, 0], [], []>} : vector<12x4xbf16>, vector<128x4xbf16>, vector<12x128xf32> -> vector<12x128xf32>
    %37 = arith.addf %28, %36 : vector<12x128xf32>
    %c1_i32_26 = arith.constant 1 : i32
    %38 = arith.addi %0, %c1_i32_26 : i32
    %c0_27 = arith.constant 0 : index
    %39 = arith.index_cast %38 : i32 to index
    %c1_28 = arith.constant 1 : index
    %c0_29 = arith.constant 0 : index
    %40 = vector.load %arg2[%c0_27, %39, %c1_28, %c0_29] : memref<1x18x18x4xbf16, #tpu.memory_space<vmem>>, vector<1x8x16x4xbf16>
    %41 = vector.shape_cast %40 : vector<1x8x16x4xbf16> to vector<8x16x4xbf16>
    %42 = vector.shape_cast %41 : vector<8x16x4xbf16> to vector<128x4xbf16>
    %c4 = arith.constant 4 : index
    %c0_30 = arith.constant 0 : index
    %c0_31 = arith.constant 0 : index
    %43 = vector.load %arg3[%c4, %c0_30, %c0_31] : memref<9x12x4xbf16, #tpu.memory_space<vmem>>, vector<1x12x4xbf16>
    %44 = vector.shape_cast %43 : vector<1x12x4xbf16> to vector<12x4xbf16>
    %cst_32 = arith.constant dense<0.000000e+00> : vector<12x128xf32>
    %45 = tpu.matmul %44, %42, %cst_32 {dimension_numbers = #tpu.dot_dimension_numbers<[1], [1], [0], [0], [0, 0, 1, 0], [], []>} : vector<12x4xbf16>, vector<128x4xbf16>, vector<12x128xf32> -> vector<12x128xf32>
    %46 = arith.addf %37, %45 : vector<12x128xf32>
    %c1_i32_33 = arith.constant 1 : i32
    %47 = arith.addi %0, %c1_i32_33 : i32
    %c0_34 = arith.constant 0 : index
    %48 = arith.index_cast %47 : i32 to index
    %c2_35 = arith.constant 2 : index
    %c0_36 = arith.constant 0 : index
    %49 = vector.load %arg2[%c0_34, %48, %c2_35, %c0_36] : memref<1x18x18x4xbf16, #tpu.memory_space<vmem>>, vector<1x8x16x4xbf16>
    %50 = vector.shape_cast %49 : vector<1x8x16x4xbf16> to vector<8x16x4xbf16>
    %51 = vector.shape_cast %50 : vector<8x16x4xbf16> to vector<128x4xbf16>
    %c5 = arith.constant 5 : index
    %c0_37 = arith.constant 0 : index
    %c0_38 = arith.constant 0 : index
    %52 = vector.load %arg3[%c5, %c0_37, %c0_38] : memref<9x12x4xbf16, #tpu.memory_space<vmem>>, vector<1x12x4xbf16>
    %53 = vector.shape_cast %52 : vector<1x12x4xbf16> to vector<12x4xbf16>
    %cst_39 = arith.constant dense<0.000000e+00> : vector<12x128xf32>
    %54 = tpu.matmul %53, %51, %cst_39 {dimension_numbers = #tpu.dot_dimension_numbers<[1], [1], [0], [0], [0, 0, 1, 0], [], []>} : vector<12x4xbf16>, vector<128x4xbf16>, vector<12x128xf32> -> vector<12x128xf32>
    %55 = arith.addf %46, %54 : vector<12x128xf32>
    %c2_i32 = arith.constant 2 : i32
    %56 = arith.addi %0, %c2_i32 : i32
    %c0_40 = arith.constant 0 : index
    %57 = arith.index_cast %56 : i32 to index
    %c0_41 = arith.constant 0 : index
    %c0_42 = arith.constant 0 : index
    %58 = vector.load %arg2[%c0_40, %57, %c0_41, %c0_42] : memref<1x18x18x4xbf16, #tpu.memory_space<vmem>>, vector<1x8x16x4xbf16>
    %59 = vector.shape_cast %58 : vector<1x8x16x4xbf16> to vector<8x16x4xbf16>
    %60 = vector.shape_cast %59 : vector<8x16x4xbf16> to vector<128x4xbf16>
    %c6 = arith.constant 6 : index
    %c0_43 = arith.constant 0 : index
    %c0_44 = arith.constant 0 : index
    %61 = vector.load %arg3[%c6, %c0_43, %c0_44] : memref<9x12x4xbf16, #tpu.memory_space<vmem>>, vector<1x12x4xbf16>
    %62 = vector.shape_cast %61 : vector<1x12x4xbf16> to vector<12x4xbf16>
    %cst_45 = arith.constant dense<0.000000e+00> : vector<12x128xf32>
    %63 = tpu.matmul %62, %60, %cst_45 {dimension_numbers = #tpu.dot_dimension_numbers<[1], [1], [0], [0], [0, 0, 1, 0], [], []>} : vector<12x4xbf16>, vector<128x4xbf16>, vector<12x128xf32> -> vector<12x128xf32>
    %64 = arith.addf %55, %63 : vector<12x128xf32>
    %c2_i32_46 = arith.constant 2 : i32
    %65 = arith.addi %0, %c2_i32_46 : i32
    %c0_47 = arith.constant 0 : index
    %66 = arith.index_cast %65 : i32 to index
    %c1_48 = arith.constant 1 : index
    %c0_49 = arith.constant 0 : index
    %67 = vector.load %arg2[%c0_47, %66, %c1_48, %c0_49] : memref<1x18x18x4xbf16, #tpu.memory_space<vmem>>, vector<1x8x16x4xbf16>
    %68 = vector.shape_cast %67 : vector<1x8x16x4xbf16> to vector<8x16x4xbf16>
    %69 = vector.shape_cast %68 : vector<8x16x4xbf16> to vector<128x4xbf16>
    %c7 = arith.constant 7 : index
    %c0_50 = arith.constant 0 : index
    %c0_51 = arith.constant 0 : index
    %70 = vector.load %arg3[%c7, %c0_50, %c0_51] : memref<9x12x4xbf16, #tpu.memory_space<vmem>>, vector<1x12x4xbf16>
    %71 = vector.shape_cast %70 : vector<1x12x4xbf16> to vector<12x4xbf16>
    %cst_52 = arith.constant dense<0.000000e+00> : vector<12x128xf32>
    %72 = tpu.matmul %71, %69, %cst_52 {dimension_numbers = #tpu.dot_dimension_numbers<[1], [1], [0], [0], [0, 0, 1, 0], [], []>} : vector<12x4xbf16>, vector<128x4xbf16>, vector<12x128xf32> -> vector<12x128xf32>
    %73 = arith.addf %64, %72 : vector<12x128xf32>
    %c2_i32_53 = arith.constant 2 : i32
    %74 = arith.addi %0, %c2_i32_53 : i32
    %c0_54 = arith.constant 0 : index
    %75 = arith.index_cast %74 : i32 to index
    %c2_55 = arith.constant 2 : index
    %c0_56 = arith.constant 0 : index
    %76 = vector.load %arg2[%c0_54, %75, %c2_55, %c0_56] : memref<1x18x18x4xbf16, #tpu.memory_space<vmem>>, vector<1x8x16x4xbf16>
    %77 = vector.shape_cast %76 : vector<1x8x16x4xbf16> to vector<8x16x4xbf16>
    %78 = vector.shape_cast %77 : vector<8x16x4xbf16> to vector<128x4xbf16>
    %c8 = arith.constant 8 : index
    %c0_57 = arith.constant 0 : index
    %c0_58 = arith.constant 0 : index
    %79 = vector.load %arg3[%c8, %c0_57, %c0_58] : memref<9x12x4xbf16, #tpu.memory_space<vmem>>, vector<1x12x4xbf16>
    %80 = vector.shape_cast %79 : vector<1x12x4xbf16> to vector<12x4xbf16>
    %cst_59 = arith.constant dense<0.000000e+00> : vector<12x128xf32>
    %81 = tpu.matmul %80, %78, %cst_59 {dimension_numbers = #tpu.dot_dimension_numbers<[1], [1], [0], [0], [0, 0, 1, 0], [], []>} : vector<12x4xbf16>, vector<128x4xbf16>, vector<12x128xf32> -> vector<12x128xf32>
    %82 = arith.addf %73, %81 : vector<12x128xf32>
    %c0_60 = arith.constant 0 : index
    %c0_61 = arith.constant 0 : index
    %83 = vector.load %arg4[%c0_60, %c0_61] : memref<12x1xf32, #tpu.memory_space<vmem>>, vector<12x1xf32>
    %84 = vector.broadcast %83 : vector<12x1xf32> to vector<12x128xf32>
    %85 = arith.addf %82, %84 : vector<12x128xf32>
    %86 = math.tanh %85 : vector<12x128xf32>
    %c0_62 = arith.constant 0 : index
    %c0_63 = arith.constant 0 : index
    %c0_64 = arith.constant 0 : index
    %87 = vector.load %arg5[%c0_62, %c0_63, %c0_64] : memref<1x12x128xf32, #tpu.memory_space<vmem>>, vector<1x12x128xf32>
    %88 = vector.shape_cast %87 : vector<1x12x128xf32> to vector<12x128xf32>
    %89 = vector.shape_cast %86 : vector<12x128xf32> to vector<1x12x128xf32>
    tpu.vector_store %arg5[%c0_62, %c0_63, %c0_64], %89 {strides = array<i32>} : memref<1x12x128xf32, #tpu.memory_space<vmem>>, vector<1x12x128xf32>,
    return
  }
  func.func @transform_0(%arg0: i32, %arg1: i32) -> (i32, i32, i32, i32) {
    %c0_i32 = arith.constant 0 : i32
    %c0_i32_0 = arith.constant 0 : i32
    %c0_i32_1 = arith.constant 0 : i32
    %c0_i32_2 = arith.constant 0 : i32
    return %arg0, %c0_i32, %c0_i32_0, %c0_i32_1 : i32, i32, i32, i32
  }
  func.func @transform_1(%arg0: i32, %arg1: i32) -> (i32, i32, i32) {
    %c0_i32 = arith.constant 0 : i32
    %c0_i32_0 = arith.constant 0 : i32
    %c0_i32_1 = arith.constant 0 : i32
    %c0_i32_2 = arith.constant 0 : i32
    return %c0_i32, %c0_i32_0, %c0_i32_1 : i32, i32, i32
  }
  func.func @transform_2(%arg0: i32, %arg1: i32) -> (i32, i32) {
    %c0_i32 = arith.constant 0 : i32
    %c0_i32_0 = arith.constant 0 : i32
    %c0_i32_1 = arith.constant 0 : i32
    return %c0_i32, %c0_i32_0 : i32, i32
  }
  func.func @transform_3(%arg0: i32, %arg1: i32) -> (i32, i32, i32) {
    %c0_i32 = arith.constant 0 : i32
    %c0_i32_0 = arith.constant 0 : i32
    return %arg0, %c0_i32, %arg1 : i32, i32, i32
  }
}

</mosaic_0001>

<bundles_post_ra>
// kernel: tile.0
= control target key start
LH: loop header
LB: loop body
LE: loop exit
PB: predicated region body
PF: predicated region fallthrough
CT: control target
= control target key end

     0   :  { %vm7_vm0 = vcmask 7168   ;;  %s26_s10 = smov 126   ;;  %s49_s0 = inlined_call_operand.vmem [shape: f32[4,3], index: 0, kind: input, shape index: {}]   ;;  %s50_s1 = inlined_call_operand.vmem [shape: f32[12,1], index: 1, kind: output, shape index: {}]  }
   0x1   :  { %v4_v0 = vld [vmem:[%s49_s0] sm:$0xf]  ;;  %s25_s0 = smov 127  }
   0x2   :  { %5 = vst [vmem:[#allocation0] sm:$0xf] %v4_v0 }
   0x9   :  { %v9_v1 = vld [vmem:[#allocation0] sm:$0xf]  }
   0xa   :  { %v6_v2 = vld [vmem:[#allocation0] sm:$0xf]   ;;  %10 = vrot.lane.b32.xlu0 %v9_v1, %s25_s0 }
   0xb   :  { %8 = vst.msk [vmem:[%s50_s1] ss:$3 sm:$0xf] %vm7_vm0, %v6_v2   ;;  %v15_v3 = vld [vmem:[#allocation0] sm:$0xf]  }
   0xe   :  { %16 = vrot.lane.b32.xlu0 %v15_v3, %s26_s10 }
  0x7c   :  { %v11_v4 = vpop.permute.xlu0 %10  }
  0x7d   :  { %21 = vst.msk [vmem:[%s50_s1 + $0x1] ss:$3 sm:$0xf] %vm7_vm0, %v11_v4  }
  0x80   :  { %v17_v5 = vpop.permute.xlu0 %16  }
  0x81   :  { %22 = vst.msk [vmem:[%s50_s1 + $0x2] ss:$3 sm:$0xf] %vm7_vm0, %v17_v5  }

// kernel: tile.8
= control target key start
LH: loop header
LB: loop body
LE: loop exit
PB: predicated region body
PF: predicated region fallthrough
CT: control target
= control target key end

     0   :  { %2 = vsyncpa [#allocation1], 0  ;;  %s44_s6 = smov [#allocation0]   ;;  %s70_s0 = inlined_call_operand.hbm [shape: f32[3], index: 0, kind: input, shape index: {}]   ;;  %s71_s1 = inlined_call_operand.vmem [shape: f32[4,3], index: 1, kind: output, shape index: {}]  }
   0x1   :  { %s9_s7 = sshll.u32 %s44_s6, 4  ;;  %s20_s10 = scalar_lea.hbm %s70_s0, 16  ;;  %s10_s7 = int_to_ptr.vmem [resolvable:$true] %s9_s7 }
   0x2   :  { %p21_p0 = scmp.ne.s32.totalorder %s70_s0, %s20_s10  ;;  %p24_p1 = scmp.lt.u32.totalorder %s20_s10, %s70_s0 }
   0x4   :  { %p26_p2 = pnand %p24_p1, %p21_p0 }
   0x6   :  { %29 = shalt.err (!%p26_p2)
}
   0x7   :  { %s30_s15 = scalar_lea.vmem %s10_s7, 16  ;;  %s34_s16 = scalar_lea.vmem %s10_s7, 32 }
   0x8   :  { %p31_p3 = scmp.ne.s32.totalorder %s10_s7, %s30_s15  ;;  %p35_p4 = scmp.lt.s32.totalorder %s10_s7, %s10_s7 }
   0x9   :  { %p36_p5 = scmp.lt.s32.totalorder %s34_s16, %s30_s15 }
   0xb   :  { %p37_p6 = por %p36_p5, %p35_p4 }
   0xd   :  { %p38_p7 = pnand %p37_p6, %p31_p3 }
   0xf   :  { %41 = shalt.err (!%p38_p7)
}
  0x10   :  { %12 = dma.hbm_to_vmem [thread:$0]  %s70_s0, 16, %s10_s7, [#allocation1]  }
  0x11   :  { %42 = dma.done.wait [#allocation1], 16  }
  0x12   :  { %43 = vsyncadd [#allocation1], 4294967280  ;;  %v16_v0 = vld [vmem:[#allocation0] ss:$0 sm:$0xff] }
  0x13   :  { %17 = vst [vmem:[%s71_s1] sm:$0xf] %v16_v0 }
  0x14   :  { %18 = vsyncpa [#allocation1], 1 }

// kernel: outconv_forward.1
= control target key start
LH: loop header
LB: loop body
LE: loop exit
PB: predicated region body
PF: predicated region fallthrough
CT: control target
= control target key end

     0   :  { %s2919_s12 = smov 0   ;;  %s2921_s13 = smov 0   ;;  %s3981_s0 = inlined_call_operand.vmem [shape: bf16[2,18,18,4], index: 0, kind: input, shape index: {}]   ;;  %s3982_s1 = inlined_call_operand.vmem [shape: bf16[9,12,4], index: 1, kind: input, shape index: {}]   ;;  %s3983_s2 = inlined_call_operand.vmem [shape: f32[12,1], index: 2, kind: input, shape index: {}]   ;;  %s3984_s3 = inlined_call_operand.vmem [shape: f32[2,12,256], index: 3, kind: output, shape index: {}]  }
   0x1   :  { %s2923_s14 = smov 0   ;;  %s2925_s15 = smov 0  }
   0x2   :  { %s2927_s16 = smov 0   ;;  %s2929_s17 = smov 0  }
   0x3   :  { %s2931_s18 = smov 0  }
   0x4 LB: > { %s22_s19 = sadd.s32 1, %s2886_s16  ;;  %s25_s20 = sadd.s32 1, %s2890_s17  ;;  %s2894_s18 = sphi %s2931_s18, %s13_s18   ;;  %s2890_s17 = sphi %s2929_s17, %s3995_s17   ;;  %s2886_s16 = sphi %s2927_s16, %s3994_s16   ;;  %s2882_s15 = sphi %s2925_s15, %s3993_s15   ;;  %s2878_s14 = sphi %s2923_s14, %s3992_s14   ;;  %s2874_s13 = sphi %s2921_s13, %s3991_s13   ;;  %s2870_s12 = sphi %s2919_s12, %s3990_s12  }
   0x5   : > { %p23_p0 = scmp.ge.s32.totalorder %s22_s19, 2  ;;  %s2235_s21 = sadd.s32 4294967295, %s2894_s18  }
   0x6   : > { %p112_p1 = scmp.ne.s32.totalorder %s2874_s13, %s2870_s12  ;;  %p113_p2 = scmp.eq.s32.totalorder %s2235_s21, 3 }
   0x7   : > { %s3997_s19 = smov (%p23_p0, %s22_s19), 0  ;;  %s3999_s20 = smov (!%p23_p0, %s25_s20), %s2890_s17 }
   0x8   : > { %s98_s22 = ssub.s32 %s2886_s16, %s3997_s19  ;;  %p27_p3 = scmp.ge.s32.totalorder %s3999_s20, 2 }
   0x9   : > { %p2239_p4 = scmp.ge.s32.totalorder %s2894_s18, 1  ;;  %p2965_p5 = por %p113_p2, %p112_p1 }
   0xa   : > { %p151_p6 = scmp.lt.s32.totalorder %s2894_s18, 5  ;;  %s4001_s20 = smov (%p27_p3, %s3999_s20), 0 }
   0xb   : > { %s97_s24 = ssub.s32 %s2890_s17, %s4001_s20  ;;  %s102_s26 = sadd.s32 1, %s2874_s13 }
   0xc   : > { %p152_p7 = pnand %p2239_p4, %p151_p6  ;;  %s99_s25 = sor.u32 %s98_s22, %s97_s24 }
   0xd   : > { %p100_p8 = scmp.eq.s32.totalorder %s99_s25, 0  ;;  %p174_p9 = scmp.lt.s32.totalorder (!%p152_p7), %s2882_s15, 1  ;;  %v2896_v0 = vmov (!%p152_p7), 0.0   ;;  %vm2897_vm0 = vmmov (!%p152_p7), 0   ;;  %vm210_vm1 = vsmask.f32 (!%p152_p7), 3328 }
   0xe   : > { %155 = sbr.rel (%p152_p7) target bundleno = 597 (0x255), region = 32  ;;  %2562 = vmatprep.subr.bf16.mxu0 (!%p152_p7), %v2896_v0  ;;  %2582 = vmatprep.subr.bf16.mxu1 (!%p152_p7), %v2896_v0  ;;  %vm437_vm2 = vcmask (!%p152_p7), 31744   ;;  %vm211_vm3 = vsmask.f32 (!%p152_p7), 7440  ;;  %vm643_vm5 = vcmask (!%p152_p7), 1042432   ;;  %vm644_vm6 = vcmask (!%p152_p7), 1046532  }
   0xf   : > { %s2976_s27 = scalar_select %p100_p8, %s2874_s13, %s102_s26  }
  0x10   : > { %s2480_s28 = smul.u32 (!%p152_p7), 96, %s2878_s14  ;;  %2578 = vmatprep.mubr.msk.bf16.mxu0 (!%p152_p7), %vm2897_vm0, %v2896_v0  ;;  %2598 = vmatprep.mubr.msk.bf16.mxu1 (!%p152_p7), %vm2897_vm0, %v2896_v0  ;;  %vm3016_vm4 = vmor (!%p152_p7), %vm210_vm1, %vm211_vm3  ;;  %v2834_v26 = vld [vmem:[%s3982_s1 + $0x38] sm:$0x3f] (!%p152_p7)   ;;  %s171_s24 = sand.u32 (!%p152_p7), 1, %s2870_s12  }
  0x11   : > { %vm3149_vm7 = vmor (!%p152_p7), %vm643_vm5, %vm644_vm6  ;;  %s2240_s25 = sshll.u32 (!%p152_p7), %s171_s24, 4 }
  0x12   : > { %s173_s26 = scalar_lea.vmem (!%p152_p7), [#allocation2], %s2240_s25 }
  0x15   : > { %s175_s29 = scalar_select %p174_p9, %s2882_s15, 1 }
  0x17   : > { %s2742_s30 = smul.u32 216, %s175_s29 }
  0x19   : > { %s178_s6 = scalar_lea.vmem %s3981_s0, %s2742_s30 }
  0x1a   : > { %s2990_s7 = scalar_lea.vmem %s178_s6, %s2480_s28  ;;  %s2476_s28 = sshll.u32 (%p2965_p5), %s2882_s15, 2 }
  0x1b   : > { %v184_v1 = vld [vmem:[%s2990_s7] sm:$0xf]  ;;  %v2994_v2 = vld [vmem:[%s2990_s7 + $0x4] sm:$0xf]  ;;  %v2997_v3 = vld [vmem:[%s2990_s7 + $0x8] sm:$0x1]  ;;  %s2122_s29 = sadd.s32 (%p2965_p5), %s2878_s14, %s2476_s28 }
  0x1c   : > { %v214_v4 = vshrl.u32 %v184_v1, 16  ;;  %v217_v5 = vshll.u32 %v184_v1, 16  ;;  %v223_v6 = vshll.u32 %v2994_v2, 16  ;;  %v227_v7 = vshrl.u32 %v2994_v2, 16  ;;  %v186_v8 = vld [vmem:[%s2990_s7 + $0xc] sm:$0xf] }
  0x1d   : > { %v233_v9 = vshll.u32 %v2997_v3, 16  ;;  %v2258_v10 = vcombine.low %v184_v1, %v2994_v2  ;;  %v3005_v11 = vld [vmem:[%s2990_s7 + $0x10] sm:$0xf]  ;;  %v3008_v16 = vld [vmem:[%s2990_s7 + $0x14] sm:$0x1]  ;;  %v238_v19 = vshrl.u32 %v186_v8, 16 }
  0x1e   : > { %v216_v12 = vrot.slane %v214_v4, 4  ;;  %v219_v13 = vrot.slane %v217_v5, 5  ;;  %v225_v14 = vrot.slane %v223_v6, 5  ;;  %v229_v15 = vrot.slane %v227_v7, 4  ;;  %v188_v25 = vld [vmem:[%s2990_s7 + $0x18] sm:$0xf] }
  0x1f   : > { %v235_v17 = vrot.slane %v233_v9, 5  ;;  %v555_v18 = vsel %vm437_vm2, %v2258_v10, 0  ;;  %v241_v20 = vshll.u32 %v186_v8, 16  ;;  %v247_v23 = vshll.u32 %v3005_v11, 16  ;;  %v3024_v35 = vld [vmem:[%s2990_s7 + $0x1c] sm:$0xf] }
  0x20   : > { %v220_v21 = vor.u32 %v219_v13, %v216_v12  ;;  %v230_v22 = vor.u32 %v229_v15, %v225_v14  ;;  %2583 = vmatpush3.bf16.xpose.msra.mxu1 %v555_v18  ;;  %v251_v24 = vshrl.u32 %v3005_v11, 16  ;;  %v240_v27 = vrot.slane %v238_v19, 4  ;;  %v3028_v39 = vld [vmem:[%s2990_s7 + $0x20] sm:$0x1]  ;;  %v190_v53 = vld [vmem:[%s2990_s7 + $0x24] sm:$0xf] }
  0x21   : > { %2584 = vmatprep.subr.bf16.mxu1 %v2896_v0  ;;  %v243_v28 = vrot.slane %v241_v20, 5  ;;  %v257_v29 = vshll.u32 %v3008_v16, 16  ;;  %v2259_v30 = vcombine.low %v186_v8, %v3005_v11  ;;  %v249_v33 = vrot.slane %v247_v23, 5  ;;  %v3042_v57 = vld [vmem:[%s2990_s7 + $0x28] sm:$0xf]  ;;  %s2477_s30 = sshll.u32 (%p2965_p5), %s2122_s29, 3 }
  0x22   : > { %v221_v31 = vrot.slane %v220_v21, 4  ;;  %v231_v32 = vrot.slane %v230_v22, 4  ;;  %v253_v34 = vrot.slane %v251_v24, 4  ;;  %v262_v40 = vshrl.u32 %v188_v25, 16  ;;  %v3048_v62 = vld [vmem:[%s2990_s7 + $0x2c] sm:$0x1]  ;;  %s2124_s12 = scalar_lea.vmem (%p2965_p5), %s3984_s3, %s2477_s30 }
  0x23   : > { %v244_v36 = vor.u32 %v243_v28, %v240_v27  ;;  %v259_v37 = vrot.slane %v257_v29, 5  ;;  %v558_v38 = vsel %vm437_vm2, %v2259_v30, 0  ;;  %v265_v44 = vshll.u32 %v188_v25, 16  ;;  %v3055_v10 = vld [vmem:[%s2990_s7 + $0x30] sm:$0xf] }
  0x24   : > { %v226_v41 = vsel %vm3016_vm4, %v221_v31, %v225_v14  ;;  %v236_v42 = vsel %vm3016_vm4, %v231_v32, %v235_v17  ;;  %v254_v43 = vor.u32 %v253_v34, %v249_v33  ;;  %v264_v47 = vrot.slane %v262_v40, 4  ;;  %v3059_v15 = vld [vmem:[%s2990_s7 + $0x34] sm:$0xf]  ;;  %v3069_v28 = vld [vmem:[%s2990_s7 + $0x38] sm:$0x1] }
  0x25   : > { %v2248_v45 = vcombine.low %v226_v41, %v236_v42  ;;  %v245_v46 = vrot.slane %v244_v36, 4  ;;  %v271_v48 = vshll.u32 %v3024_v35, 16  ;;  %v267_v50 = vrot.slane %v265_v44, 5  ;;  %v3075_v34 = vld [vmem:[%s2990_s7 + $0x3c] sm:$0xf] }
  0x26   : > { %v255_v49 = vrot.slane %v254_v43, 4  ;;  %v275_v51 = vshrl.u32 %v3024_v35, 16  ;;  %v281_v52 = vshll.u32 %v3028_v39, 16  ;;  %v2260_v61 = vcombine.low %v188_v25, %v3024_v35  ;;  %v3079_v41 = vld [vmem:[%s2990_s7 + $0x40] sm:$0xf] }
  0x27   : > { %v442_v54 = vsel %vm437_vm2, %v2248_v45, 0  ;;  %v250_v55 = vsel %vm3016_vm4, %v245_v46, %v249_v33  ;;  %v273_v56 = vrot.slane %v271_v48, 5  ;;  %v268_v59 = vor.u32 %v267_v50, %v264_v47 }
  0x28   : > { %2563 = vmatpush3.bf16.xpose.msra.mxu0 %v442_v54  ;;  %v260_v58 = vsel %vm3016_vm4, %v255_v49, %v259_v37  ;;  %2585 = vmatpush3.bf16.xpose.msra.mxu1 %v558_v38  ;;  %v277_v60 = vrot.slane %v275_v51, 4  ;;  %v283_v1 = vrot.slane %v281_v52, 5  ;;  %v286_v4 = vshrl.u32 %v190_v53, 16  ;;  %v3090_v54 = vld [vmem:[%s2990_s7 + $0x48] sm:$0xf] }
  0x29   : > { %2564 = vmatprep.subr.bf16.mxu0 %v2896_v0  ;;  %v2249_v63 = vcombine.low %v250_v55, %v260_v58  ;;  %2586 = vmatprep.subr.bf16.mxu1 %v2896_v0  ;;  %v289_v5 = vshll.u32 %v190_v53, 16  ;;  %v269_v6 = vrot.slane %v268_v59, 4  ;;  %v295_v8 = vshll.u32 %v3042_v57, 16  ;;  %v3097_v58 = vld [vmem:[%s2990_s7 + $0x44] sm:$0x1] }
  0x2a   : > { %v278_v7 = vor.u32 %v277_v60, %v273_v56  ;;  %v299_v9 = vshrl.u32 %v3042_v57, 16  ;;  %v288_v12 = vrot.slane %v286_v4, 4  ;;  %v305_v14 = vshll.u32 %v3048_v62, 16 }
  0x2b   : > { %v291_v13 = vrot.slane %v289_v5, 5  ;;  %v561_v18 = vsel %vm437_vm2, %v2260_v61, 0  ;;  %v297_v19 = vrot.slane %v295_v8, 5  ;;  %v445_v21 = vsel %vm437_vm2, %v2249_v63, 0 }
  0x2c   : > { %v279_v17 = vrot.slane %v278_v7, 4  ;;  %v301_v20 = vrot.slane %v299_v9, 4  ;;  %v274_v22 = vsel %vm3016_vm4, %v269_v6, %v273_v56  ;;  %v310_v24 = vshrl.u32 %v3055_v10, 16  ;;  %v3103_v9 = vld [vmem:[%s2990_s7 + $0x4c] sm:$0xf] }
  0x2d   : > { %v292_v23 = vor.u32 %v291_v13, %v288_v12  ;;  %v313_v29 = vshll.u32 %v3055_v10, 16  ;;  %v319_v30 = vshll.u32 %v3059_v15, 16  ;;  %v307_v31 = vrot.slane %v305_v14, 5 }
  0x2e   : > { %v284_v25 = vsel %vm3016_vm4, %v279_v17, %v283_v1  ;;  %v302_v27 = vor.u32 %v301_v20, %v297_v19  ;;  %v2261_v32 = vcombine.low %v190_v53, %v3042_v57  ;;  %v312_v33 = vrot.slane %v310_v24, 4  ;;  %v3115_v20 = vld [vmem:[%s2990_s7 + $0x50] sm:$0x1] }
  0x2f   : > { %v2250_v36 = vcombine.low %v274_v22, %v284_v25  ;;  %v315_v37 = vrot.slane %v313_v29, 5  ;;  %v321_v38 = vrot.slane %v319_v30, 5  ;;  %v323_v40 = vshrl.u32 %v3059_v15, 16 }
  0x30   : > { %2565 = vmatpush3.bf16.xpose.msra.mxu0 %v445_v21  ;;  %2587 = vmatpush3.bf16.xpose.msra.mxu1 %v561_v18  ;;  %v293_v42 = vrot.slane %v292_v23, 4  ;;  %v303_v43 = vrot.slane %v302_v27, 4  ;;  %v329_v46 = vshll.u32 %v3069_v28, 16  ;;  %v334_v47 = vshrl.u32 %v3075_v34, 16 }
  0x31   : > { %2566 = vmatprep.subr.bf16.mxu0 %v2896_v0  ;;  %2588 = vmatprep.subr.bf16.mxu1 %v2896_v0  ;;  %v316_v44 = vor.u32 %v315_v37, %v312_v33  ;;  %v325_v45 = vrot.slane %v323_v40, 4  ;;  %v564_v48 = vsel %vm437_vm2, %v2261_v32, 0  ;;  %v337_v49 = vshll.u32 %v3075_v34, 16  ;;  %v3124_v32 = vld [vmem:[%s2990_s7 + $0x54] sm:$0xf] }
  0x32   : > { %v448_v50 = vsel %vm437_vm2, %v2250_v36, 0  ;;  %v336_v52 = vrot.slane %v334_v47, 4  ;;  %v343_v53 = vshll.u32 %v3079_v41, 16  ;;  %v298_v55 = vsel %vm3016_vm4, %v293_v42, %v297_v19  ;;  %v619_v40 = vld [vmem:[%s2990_s7] sm:$0xe] }
  0x33   : > { %v326_v51 = vor.u32 %v325_v45, %v321_v38  ;;  %v308_v56 = vsel %vm3016_vm4, %v303_v43, %v307_v31  ;;  %v339_v59 = vrot.slane %v337_v49, 5  ;;  %v347_v60 = vshrl.u32 %v3079_v41, 16 }
  0x34   : > { %v317_v61 = vrot.slane %v316_v44, 4  ;;  %v331_v1 = vrot.slane %v329_v46, 5  ;;  %v345_v4 = vrot.slane %v343_v53, 5  ;;  %v358_v6 = vshrl.u32 %v3090_v54, 16 }
  0x35   : > { %v327_v63 = vrot.slane %v326_v51, 4  ;;  %v349_v5 = vrot.slane %v347_v60, 4  ;;  %v340_v7 = vor.u32 %v339_v59, %v336_v52  ;;  %v353_v8 = vshll.u32 %v3097_v58, 16 }
  0x36   : > { %v361_v12 = vshll.u32 %v3090_v54, 16  ;;  %v2251_v13 = vcombine.low %v298_v55, %v308_v56  ;;  %v2262_v14 = vcombine.low %v3055_v10, %v3059_v15  ;;  %v322_v18 = vsel %vm3016_vm4, %v317_v61, %v321_v38  ;;  %v3130_v38 = vld [vmem:[%s2990_s7 + $0x58] sm:$0xf] }
  0x37   : > { %v350_v17 = vor.u32 %v349_v5, %v345_v4  ;;  %v332_v19 = vsel %vm3016_vm4, %v327_v63, %v331_v1  ;;  %v360_v21 = vrot.slane %v358_v6, 4  ;;  %v367_v23 = vshll.u32 %v3103_v9, 16  ;;  %v621_v1 = vld [vmem:[%s2990_s7 + $0x18] sm:$0xe] }
  0x38   : > { %2567 = vmatpush3.bf16.xpose.msra.mxu0 %v448_v50  ;;  %2589 = vmatpush3.bf16.xpose.msra.mxu1 %v564_v48  ;;  %v363_v22 = vrot.slane %v361_v12, 5  ;;  %v371_v24 = vshrl.u32 %v3103_v9, 16  ;;  %v341_v25 = vrot.slane %v340_v7, 4  ;;  %v355_v10 = vrot.slane %v353_v8, 5  ;;  %v620_v48 = vld [vmem:[%s2990_s7 + $0xc] sm:$0xe] }
  0x39   : > { %2568 = vmatprep.subr.bf16.mxu0 %v2896_v0  ;;  %2590 = vmatprep.subr.bf16.mxu1 %v2896_v0  ;;  %v351_v27 = vrot.slane %v350_v17, 4  ;;  %v2263_v29 = vcombine.low %v3075_v34, %v3079_v41  ;;  %v451_v30 = vsel %vm437_vm2, %v2251_v13, 0  ;;  %v567_v31 = vsel %vm437_vm2, %v2262_v14, 0  ;;  %v622_v17 = vld [vmem:[%s2990_s7 + $0x24] sm:$0xe] }
  0x3a   : > { %v2252_v33 = vcombine.low %v322_v18, %v332_v19  ;;  %v377_v36 = vshll.u32 %v3115_v20, 16  ;;  %v2264_v37 = vcombine.low %v3090_v54, %v3103_v9  ;;  %v364_v42 = vor.u32 %v363_v22, %v360_v21 }
  0x3b   : > { %v3133_v34 = vrot.slane %v367_v23, 5  ;;  %v373_v43 = vrot.slane %v371_v24, 4  ;;  %v651_v44 = vrot.slane %v2997_v3, 5  ;;  %v346_v45 = vsel %vm3016_vm4, %v341_v25, %v345_v4  ;;  %v3165_v4 = vld [vmem:[%s2990_s7 + $0x5c] sm:$0x1] }
  0x3c   : > { %v356_v46 = vsel %vm3016_vm4, %v351_v27, %v355_v10  ;;  %v570_v47 = vsel %vm437_vm2, %v2263_v29, 0  ;;  %v382_v49 = vshrl.u32 %v3124_v32, 16  ;;  %v385_v3 = vshll.u32 %v3124_v32, 16 }
  0x3d   : > { %v391_v50 = vshll.u32 %v3130_v38, 16  ;;  %v2267_v52 = vrot.slane %v619_v40, 9  ;;  %v454_v53 = vsel %vm437_vm2, %v2252_v33, 0  ;;  %v3154_v54 = vrot.slane %v377_v36, 5 }
  0x3e   : > { %v3157_v55 = vsel %vm437_vm2, %v2264_v37, 0  ;;  %v648_v56 = vrot.slane %v2994_v2, 5  ;;  %v2253_v59 = vcombine.low %v346_v45, %v356_v46  ;;  %v3160_v60 = vrot.slane %v364_v42, 4 }
  0x3f   : > { %v374_v61 = vor.u32 %v373_v43, %v3133_v34  ;;  %v2268_v63 = vrot.slane %v620_v48, 9  ;;  %v655_v7 = vrot.slane %v3005_v11, 5  ;;  %v658_v8 = vrot.slane %v3008_v16, 5  ;;  %v625_v48 = vld [vmem:[%s2990_s7 + $0x48] sm:$0xe] }
  0x40   : > { %2569 = vmatpush3.bf16.xpose.msra.mxu0 %v451_v30  ;;  %2591 = vmatpush3.bf16.xpose.msra.mxu1 %v567_v31  ;;  %v3169_v5 = vsel %vm3149_vm7, %v2267_v52, %v648_v56  ;;  %v650_v6 = vrot.slane %v648_v56, 4  ;;  %v384_v12 = vrot.slane %v382_v49, 4  ;;  %v387_v2 = vrot.slane %v385_v3, 5  ;;  %v623_v30 = vld [vmem:[%s2990_s7 + $0x30] sm:$0xe] }
  0x41   : > { %2570 = vmatprep.subr.bf16.mxu0 %v2896_v0  ;;  %2592 = vmatprep.subr.bf16.mxu1 %v2896_v0  ;;  %v3173_v13 = vrot.slane %v391_v50, 5  ;;  %v395_v14 = vshrl.u32 %v3130_v38, 16  ;;  %v3183_v19 = vsel %vm3149_vm7, %v2268_v63, %v655_v7  ;;  %v657_v21 = vrot.slane %v655_v7, 4 }
  0x42   : > { %v3179_v18 = vsel %vm3149_vm7, %v650_v6, %v651_v44  ;;  %v2269_v11 = vrot.slane %v621_v1, 9  ;;  %v401_v16 = vshll.u32 %v3165_v4, 16  ;;  %v662_v23 = vrot.slane %v3024_v35, 5 }
  0x43   : > { %v2278_v22 = vcombine.low %v3169_v5, %v3179_v18  ;;  %v665_v24 = vrot.slane %v3028_v39, 5  ;;  %v457_v25 = vsel %vm437_vm2, %v2253_v59, 0  ;;  %v370_v27 = vsel %vm3016_vm4, %v3160_v60, %v3133_v34  ;;  %v624_v34 = vld [vmem:[%s2990_s7 + $0x3c] sm:$0xe]  ;;  %v626_v59 = vld [vmem:[%s2990_s7 + $0x54] sm:$0xe] }
  0x44   : > { %v3197_v10 = vsel %vm3149_vm7, %v657_v21, %v658_v8  ;;  %v2270_v29 = vrot.slane %v622_v17, 9  ;;  %v375_v35 = vrot.slane %v374_v61, 4  ;;  %v3206_v31 = vsel %vm3149_vm7, %v2269_v11, %v662_v23 }
  0x45   : > { %v2279_v39 = vcombine.low %v3183_v19, %v3197_v10  ;;  %v664_v33 = vrot.slane %v662_v23, 4  ;;  %v397_v36 = vrot.slane %v395_v14, 4  ;;  %v2265_v37 = vcombine.low %v3124_v32, %v3130_v38  ;;  %v2817_v10 = vld [vmem:[%s2990_s7 + $0x3c] sm:$0xff]  }
  0x46   : > { %v669_v40 = vrot.slane %v3042_v57, 5  ;;  %v672_v42 = vrot.slane %v3048_v62, 5  ;;  %v388_v43 = vor.u32 %v387_v2, %v384_v12  ;;  %v2271_v45 = vrot.slane %v623_v30, 9 }
  0x47   : > { %v3215_v44 = vsel %vm3149_vm7, %v664_v33, %v665_v24  ;;  %v676_v46 = vrot.slane %v3059_v15, 5  ;;  %v679_v62 = vrot.slane %v3069_v28, 5  ;;  %v380_v49 = vsel %vm3016_vm4, %v375_v35, %v3154_v54 }
  0x48   : > { %2571 = vmatpush3.bf16.xpose.msra.mxu0 %v454_v53  ;;  %2593 = vmatpush3.bf16.xpose.msra.mxu1 %v570_v47  ;;  %v2280_v47 = vcombine.low %v3206_v31, %v3215_v44  ;;  %v3222_v32 = vsel %vm3149_vm7, %v2270_v29, %v669_v40  ;;  %v671_v57 = vrot.slane %v669_v40, 4  ;;  %v2272_v50 = vrot.slane %v624_v34, 9  ;;  %v2811_v34 = vld [vmem:[%s3982_s1 + $0x8] sm:$0x3f]  }
  0x49   : > { %2572 = vmatprep.subr.bf16.mxu0 %v2896_v0  ;;  %2594 = vmatprep.subr.bf16.mxu1 %v2896_v0  ;;  %v3231_v3 = vsel %vm3149_vm7, %v2271_v45, %v676_v46  ;;  %v678_v15 = vrot.slane %v676_v46, 4  ;;  %v398_v52 = vor.u32 %v397_v36, %v3173_v13  ;;  %v683_v56 = vrot.slane %v3079_v41, 5  ;;  %v2813_v36 = vld [vmem:[%s2990_s7 + $0xc] sm:$0xff]   ;;  %v2815_v46 = vld [vmem:[%s2990_s7 + $0x24] sm:$0xff]  }
  0x4a   : > { %v3236_v53 = vsel %vm3149_vm7, %v671_v57, %v672_v42  ;;  %v686_v28 = vrot.slane %v3097_v58, 5  ;;  %v403_v60 = vrot.slane %v401_v16, 5  ;;  %v2273_v63 = vrot.slane %v625_v48, 9  ;;  %v2814_v42 = vld [vmem:[%s2990_s7 + $0x18] sm:$0xff]   ;;  %v2818_v31 = vld [vmem:[%s2990_s7 + $0x48] sm:$0xff]  }
  0x4b   : > { %v2281_v54 = vcombine.low %v3222_v32, %v3236_v53  ;;  %v3245_v61 = vsel %vm3149_vm7, %v678_v15, %v679_v62  ;;  %v3252_v41 = vsel %vm3149_vm7, %v2272_v50, %v683_v56  ;;  %v685_v58 = vrot.slane %v683_v56, 4  ;;  %v2317_v44 = vld [vmem:[%s2990_s7 + $0xc] sm:$0xf]  ;;  %v2819_v53 = vld [vmem:[%s2990_s7 + $0x54] sm:$0xff]  }
  0x4c   : > { %v2282_v1 = vcombine.low %v3231_v3, %v3245_v61  ;;  %v690_v6 = vrot.slane %v3103_v9, 5  ;;  %v2254_v7 = vcombine.low %v370_v27, %v380_v49  ;;  %v389_v8 = vrot.slane %v388_v43, 4  ;;  %v2319_v56 = vld [vmem:[%s2990_s7 + $0x14] sm:$0x1]  ;;  %v2320_v61 = vld [vmem:[%s2990_s7 + $0x18] sm:$0xf] }
  0x4d   : > { %v693_v12 = vrot.slane %v3115_v20, 5  ;;  %v2274_v2 = vrot.slane %v626_v59, 9  ;;  %v3260_v14 = vsel %vm3149_vm7, %v685_v58, %v686_v28  ;;  %v697_v11 = vrot.slane %v3130_v38, 5 }
  0x4e   : > { %v3264_v17 = vsel %vm3149_vm7, %v2273_v63, %v690_v6  ;;  %v692_v21 = vrot.slane %v690_v6, 4  ;;  %v2283_v9 = vcombine.low %v3252_v41, %v3260_v14  ;;  %v700_v16 = vrot.slane %v3165_v4, 5  ;;  %v2353_v63 = vld [vmem:[%s2990_s7 + $0xc] sm:$0xe]  ;;  %v2820_v41 = vld [vmem:[%s2990_s7 + $0x60] sm:$0xff]  }
  0x4f   : > { %v576_v20 = vsel %vm437_vm2, %v2265_v37, 0  ;;  %v460_v24 = vsel %vm437_vm2, %v2254_v7, 0  ;;  %v3280_v27 = vsel %vm3149_vm7, %v2274_v2, %v697_v11  ;;  %v699_v29 = vrot.slane %v697_v11, 4 }
  0x50   : > { %2573 = vmatpush3.bf16.xpose.msra.mxu0 %v457_v25  ;;  %2595 = vmatpush3.bf16.xpose.msra.mxu1 %v3157_v55  ;;  %v399_v55 = vrot.slane %v398_v52, 4  ;;  %v3273_v23 = vsel %vm3149_vm7, %v692_v21, %v693_v12  ;;  %v394_v38 = vsel %vm3016_vm4, %v389_v8, %v3173_v13  ;;  %v2812_v13 = vld [vmem:[%s3982_s1] sm:$0x3f]   ;;  %v876_v40 = vsel %vm437_vm2, %v2813_v36, 0  ;;  %v3364_v12 = vld [vmem:[%s2990_s7 + $0x1c] sm:$0xf] }
  0x51   : > { %2574 = vmatprep.subr.bf16.mxu0 %v2896_v0  ;;  %2596 = vmatprep.subr.bf16.mxu1 %v2896_v0  ;;  %v2284_v25 = vcombine.low %v3264_v17, %v3273_v23  ;;  %v3289_v30 = vsel %vm3149_vm7, %v699_v29, %v700_v16  ;;  %v738_v43 = vsel %vm437_vm2, %v2278_v22, 0  ;;  %v879_v45 = vsel %vm437_vm2, %v2814_v42, 0  ;;  %v2816_v22 = vld [vmem:[%s2990_s7 + $0x30] sm:$0xff]   ;;  %v3371_v29 = vld [vmem:[%s2990_s7 + $0x28] sm:$0xf] }
  0x52   : > { %v404_v4 = vsel %vm3016_vm4, %v399_v55, %v403_v60  ;;  %v2285_v35 = vcombine.low %v3280_v27, %v3289_v30  ;;  %v741_v5 = vsel %vm437_vm2, %v2279_v39, 0  ;;  %v882_v18 = vsel %vm437_vm2, %v2815_v46, 0  ;;  %v3397_v23 = vld [vmem:[%s2990_s7 + $0x34] sm:$0xf]  ;;  %v2355_v30 = vld [vmem:[%s2990_s7 + $0x24] sm:$0xe] }
  0x53   : > { %v2255_v33 = vcombine.low %v394_v38, %v404_v4  ;;  %v744_v57 = vsel %vm437_vm2, %v2280_v47, 0  ;;  %v885_v19 = vsel %vm437_vm2, %v2816_v22, 0  ;;  %v747_v39 = vsel %vm437_vm2, %v2281_v54, 0  ;;  %v2318_v47 = vld [vmem:[%s2990_s7 + $0x10] sm:$0xf] }
  0x54   : > { %v888_v62 = vsel %vm437_vm2, %v2817_v10, 0  ;;  %v750_v32 = vsel %vm437_vm2, %v2282_v1, 0  ;;  %v891_v48 = vsel %vm437_vm2, %v2818_v31, 0  ;;  %v967_v49 = vshrl.u32 %v2317_v44, 16 }
  0x55   : > { %v463_v37 = vsel %vm437_vm2, %v2255_v33, 0  ;;  %v970_v15 = vshll.u32 %v2317_v44, 16  ;;  %v976_v50 = vshll.u32 %v2318_v47, 16  ;;  %v980_v52 = vshrl.u32 %v2318_v47, 16  ;;  %v2326_v44 = vld [vmem:[%s2990_s7 + $0x30] sm:$0xf] }
  0x56   : > { %v969_v3 = vrot.slane %v967_v49, 4  ;;  %v1294_v54 = vrot.slane %v2318_v47, 5  ;;  %v753_v1 = vsel %vm437_vm2, %v2283_v9, 0  ;;  %v894_v58 = vsel %vm437_vm2, %v2819_v53, 0 }
  0x57   : > { %v972_v28 = vrot.slane %v970_v15, 5  ;;  %v978_v59 = vrot.slane %v976_v50, 5  ;;  %v982_v60 = vrot.slane %v980_v52, 4  ;;  %v986_v6 = vshll.u32 %v2319_v56, 16 }
  0x58   : > { %2575 = vmatpush3.bf16.xpose.msra.mxu0 %v460_v24  ;;  %2597 = vmatpush3.bf16.xpose.msra.mxu1 %v576_v20  ;;  %v991_v2 = vshrl.u32 %v2320_v61, 16  ;;  %v994_v55 = vshll.u32 %v2320_v61, 16  ;;  %v2361_v21 = vrot.slane %v2353_v63, 9  ;;  %v1296_v11 = vrot.slane %v1294_v54, 4  ;;  %v2323_v20 = vld [vmem:[%s2990_s7 + $0x24] sm:$0xf] }
  0x59   : > { %2576 = vmatprep.subr.bf16.mxu0 %v2896_v0  ;;  %2622 = vmatprep.subr.bf16.mxu1 %v2896_v0  ;;  %v973_v7 = vor.u32 %v972_v28, %v969_v3  ;;  %v983_v8 = vor.u32 %v982_v60, %v978_v59  ;;  %v1297_v16 = vrot.slane %v2319_v56, 5  ;;  %v988_v14 = vrot.slane %v986_v6, 5 }
  0x5a   : > { %v1000_v9 = vshll.u32 %v3364_v12, 16  ;;  %v1004_v24 = vshrl.u32 %v3364_v12, 16  ;;  %v993_v33 = vrot.slane %v991_v2, 4  ;;  %v996_v36 = vrot.slane %v994_v55, 5  ;;  %v2329_v2 = vld [vmem:[%s2990_s7 + $0x3c] sm:$0xf] }
  0x5b   : > { %v974_v38 = vrot.slane %v973_v7, 4  ;;  %v984_v4 = vrot.slane %v983_v8, 4  ;;  %v1301_v42 = vrot.slane %v3364_v12, 5  ;;  %v1024_v46 = vshll.u32 %v3371_v29, 16 }
  0x5c   : > { %v897_v22 = vsel %vm437_vm2, %v2820_v41, 0  ;;  %v1039_v3 = vshrl.u32 %v2326_v44, 16  ;;  %v1042_v28 = vshll.u32 %v2326_v44, 16  ;;  %v1052_v61 = vshrl.u32 %v3397_v23, 16 }
  0x5d   : > { %v979_v10 = vsel %vm3016_vm4, %v974_v38, %v978_v59  ;;  %v3402_v50 = vrot.slane %v1024_v46, 5  ;;  %v759_v59 = vsel %vm437_vm2, %v2285_v35, 0  ;;  %v2822_v35 = vld [vmem:[%s3982_s1 + $0x18] sm:$0x3f]   ;;  %v1308_v12 = vrot.slane %v3371_v29, 5 }
  0x5e   : > { %v2363_v41 = vrot.slane %v2355_v30, 9  ;;  %v1315_v38 = vrot.slane %v3397_v23, 5 }
  0x5f   : > { %2599 = vmatmul.mubr.msk.bf16.vlgmr.msra.gmra.mrb[0].mxu1 %vm437_vm2, %v2812_v13  ;;  %v1295_v13 = vsel %vm3149_vm7, %v2361_v21, %v1294_v54  ;;  %v1048_v54 = vshll.u32 %v3397_v23, 16 }
  0x60   : > { %2577 = vmatpush3.bf16.xpose.msra.mxu0 %v463_v37  ;;  %2623 = vmatpush3.bf16.xpose.msra.mxu1 %v876_v40  ;;  %v1298_v37 = vsel %vm3149_vm7, %v1296_v11, %v1297_v16  ;;  %v2322_v40 = vld [vmem:[%s2990_s7 + $0x20] sm:$0x1]  ;;  %v2328_v11 = vld [vmem:[%s2990_s7 + $0x38] sm:$0x1]  ;;  %v1041_v16 = vrot.slane %v1039_v3, 4 }
  0x61   : > { %2602 = vmatprep.subr.bf16.mxu0 %v2896_v0  ;;  %2624 = vmatprep.subr.bf16.mxu1 %v2896_v0  ;;  %v1010_v31 = vshll.u32 %v2322_v40, 16  ;;  %v2372_v47 = vcombine.low %v1295_v13, %v1298_v37  ;;  %v1304_v17 = vrot.slane %v2322_v40, 5  ;;  %v1063_v13 = vshrl.u32 %v2329_v2, 16 }
  0x62   : > { %2638 = vmatprep.mubr.msk.bf16.mxu1 %vm2897_vm0, %v2896_v0 }
  0x63   : > { %v3411_v60 = vrot.slane %v1010_v31, 5  ;;  %v1384_v63 = vsel %vm437_vm2, %v2372_v47, 0  ;;  %v1065_v31 = vrot.slane %v1063_v13, 4  ;;  %v2821_v47 = vld [vmem:[%s3982_s1 + $0x10] sm:$0x3f]  }
  0x67   : > { %2579 = vmatmul.mubr.msk.bf16.vlgmr.msra.gmra.mrb[0].mxu0 %vm437_vm2, %v2811_v34  ;;  %v2354_v34 = vld [vmem:[%s2990_s7 + $0x18] sm:$0xe] }
  0x68   : > { %2603 = vmatpush3.bf16.xpose.msra.mxu0 %v738_v43  ;;  %2625 = vmatpush3.bf16.xpose.msra.mxu1 %v879_v45  ;;  %v1015_v43 = vshrl.u32 %v2323_v20, 16  ;;  %v1018_v45 = vshll.u32 %v2323_v20, 16  ;;  %v1044_v20 = vrot.slane %v1042_v28, 5 }
  0x69   : > { %2604 = vmatprep.subr.bf16.mxu0 %v2896_v0  ;;  %2626 = vmatprep.subr.bf16.mxu1 %v2896_v0 }
  0x6a   : > { %2618 = vmatprep.mubr.msk.bf16.mxu0 %vm2897_vm0, %v2896_v0  ;;  %v1017_v49 = vrot.slane %v1015_v43, 4  ;;  %v1020_v15 = vrot.slane %v1018_v45, 5  ;;  %v1045_v43 = vor.u32 %v1044_v20, %v1041_v16  ;;  %v1058_v45 = vshll.u32 %v2328_v11, 16 }
  0x6c   : > { %v1021_v7 = vor.u32 %v1020_v15, %v1017_v49  ;;  %v1060_v49 = vrot.slane %v1058_v45, 5 }
  0x6e   : > { %v1022_v37 = vrot.slane %v1021_v7, 4 }
  0x70   : > { %2605 = vmatpush3.bf16.xpose.msra.mxu0 %v741_v5  ;;  %2627 = vmatpush3.bf16.xpose.msra.mxu1 %v882_v18  ;;  %v1028_v5 = vshrl.u32 %v3371_v29, 16  ;;  %v756_v18 = vsel %vm437_vm2, %v2284_v25, 0  ;;  %v3400_v25 = vld [vmem:[%s2990_s7 + $0x2c] sm:$0x1]  ;;  %v1066_v29 = vshll.u32 %v2329_v2, 16 }
  0x71   : > { %2606 = vmatprep.subr.bf16.mxu0 %v2896_v0  ;;  %2628 = vmatprep.subr.bf16.mxu1 %v2896_v0  ;;  %v1034_v27 = vshll.u32 %v3400_v25, 16 }
  0x72   : > { %v1030_v52 = vrot.slane %v1028_v5, 4  ;;  %v1318_v5 = vrot.slane %v2328_v11, 5  ;;  %v1068_v44 = vrot.slane %v1066_v29, 5 }
  0x74   : > { %v1031_v8 = vor.u32 %v1030_v52, %v3402_v50  ;;  %v2331_v52 = vld [vmem:[%s2990_s7 + $0x44] sm:$0x1] }
  0x75   : > { %v1082_v7 = vshll.u32 %v2331_v52, 16 }
  0x76   : > { %v1032_v40 = vrot.slane %v1031_v8, 4 }
  0x77   : > { %v3510_v29 = vrot.slane %v1082_v7, 5 }
  0x78   : > { %2607 = vmatpush3.bf16.xpose.msra.mxu0 %v744_v57  ;;  %2629 = vmatpush3.bf16.xpose.msra.mxu1 %v885_v19  ;;  %v3389_v57 = vrot.slane %v1000_v9, 5  ;;  %v1006_v19 = vrot.slane %v1004_v24, 4  ;;  %v1054_v9 = vrot.slane %v1052_v61, 4  ;;  %v2356_v24 = vld [vmem:[%s2990_s7 + $0x30] sm:$0xe] }
  0x79   : > { %2608 = vmatprep.subr.bf16.mxu0 %v2896_v0  ;;  %2630 = vmatprep.subr.bf16.mxu1 %v2896_v0  ;;  %v2364_v46 = vrot.slane %v2356_v24, 9 }
  0x7a   : > { %v1007_v56 = vor.u32 %v1006_v19, %v3389_v57 }
  0x7b   : > { %v1316_v15 = vsel %vm3149_vm7, %v2364_v46, %v1315_v38  ;;  %v3525_v46 = vld [vmem:[%s2990_s7 + $0x20] sm:$0x1] }
  0x7c   : > { %v1008_v21 = vrot.slane %v1007_v56, 4 }
  0x80   : > { %2609 = vmatpush3.bf16.xpose.msra.mxu0 %v747_v39  ;;  %2631 = vmatpush3.bf16.xpose.msra.mxu1 %v888_v62  ;;  %v989_v39 = vsel %vm3016_vm4, %v984_v4, %v988_v14  ;;  %v997_v62 = vor.u32 %v996_v36, %v993_v33  ;;  %v3432_v14 = vrot.slane %v1048_v54, 5  ;;  %v1036_v33 = vrot.slane %v1034_v27, 5  ;;  %v3437_v36 = vld [vmem:[%s2990_s7 + $0x40] sm:$0xf] }
  0x81   : > { %2610 = vmatprep.subr.bf16.mxu0 %v2896_v0  ;;  %2632 = vmatprep.subr.bf16.mxu1 %v2896_v0  ;;  %v2344_v53 = vcombine.low %v979_v10, %v989_v39  ;;  %v1072_v19 = vshll.u32 %v3437_v36, 16  ;;  %v1076_v10 = vshrl.u32 %v3437_v36, 16  ;;  %v1069_v54 = vor.u32 %v1068_v44, %v1065_v31 }
  0x82   : > { %v1037_v23 = vsel %vm3016_vm4, %v1032_v40, %v1036_v33  ;;  %v1322_v61 = vrot.slane %v3437_v36, 5  ;;  %v3517_v40 = vld [vmem:[%s2990_s7 + $0x1c] sm:$0xf] }
  0x83   : > { %v1194_v55 = vsel %vm437_vm2, %v2344_v53, 0  ;;  %v2332_v53 = vld [vmem:[%s2990_s7 + $0x48] sm:$0xf]  ;;  %v3474_v3 = vrot.slane %v1072_v19, 5  ;;  %v1078_v28 = vrot.slane %v1076_v10, 4  ;;  %v3493_v16 = vrot.slane %v1069_v54, 4 }
  0x84   : > { %v1087_v27 = vshrl.u32 %v2332_v53, 16  ;;  %v1090_v30 = vshll.u32 %v2332_v53, 16  ;;  %v1324_v20 = vrot.slane %v1322_v61, 4  ;;  %v2335_v19 = vld [vmem:[%s2990_s7 + $0x54] sm:$0xf] }
  0x85   : > { %v1079_v2 = vor.u32 %v1078_v28, %v3474_v3  ;;  %v3537_v10 = vld [vmem:[%s2990_s7 + $0x28] sm:$0xf]  ;;  %v1111_v53 = vshrl.u32 %v2335_v19, 16  ;;  %v2449_v28 = vld [vmem:[%s2990_s7 + $0x30] sm:$0xe] }
  0x86   : > { %v1092_v33 = vrot.slane %v1090_v30, 5 }
  0x88   : > { %2611 = vmatpush3.bf16.xpose.msra.mxu0 %v750_v32  ;;  %2633 = vmatpush3.bf16.xpose.msra.mxu1 %v891_v48  ;;  %v2362_v32 = vrot.slane %v2354_v34, 9  ;;  %v1303_v48 = vrot.slane %v1301_v42, 4  ;;  %v1311_v34 = vrot.slane %v3400_v25, 5  ;;  %v1046_v25 = vrot.slane %v1045_v43, 4 }
  0x89   : > { %2612 = vmatprep.subr.bf16.mxu0 %v2896_v0  ;;  %2634 = vmatprep.subr.bf16.mxu1 %v2896_v0 }
  0x8a   : > { %v1305_v6 = vsel %vm3149_vm7, %v1303_v48, %v1304_v17  ;;  %v1309_v48 = vsel %vm3149_vm7, %v2363_v41, %v1308_v12  ;;  %v1325_v41 = vrot.slane %v2331_v52, 5 }
  0x90   : > { %2613 = vmatpush3.bf16.xpose.msra.mxu0 %v753_v1  ;;  %2635 = vmatpush3.bf16.xpose.msra.mxu1 %v894_v58  ;;  %v3416_v1 = vrot.slane %v997_v62, 4  ;;  %v1302_v58 = vsel %vm3149_vm7, %v2362_v32, %v1301_v42  ;;  %v1310_v42 = vrot.slane %v1308_v12, 4  ;;  %v1013_v62 = vsel %vm3016_vm4, %v1008_v21, %v3411_v60 }
  0x91   : > { %2614 = vmatprep.subr.bf16.mxu0 %v2896_v0  ;;  %2636 = vmatprep.subr.bf16.mxu1 %v2896_v0  ;;  %v2373_v4 = vcombine.low %v1302_v58, %v1305_v6 }
  0x92   : > { %v1003_v39 = vsel %vm3016_vm4, %v3416_v1, %v3389_v57  ;;  %v1027_v57 = vsel %vm3016_vm4, %v1022_v37, %v3402_v50  ;;  %v1312_v17 = vsel %vm3149_vm7, %v1310_v42, %v1311_v34  ;;  %v2448_v42 = vld [vmem:[%s2990_s7 + $0x24] sm:$0xe]  ;;  %v3520_v34 = vrot.slane %v1079_v2, 4 }
  0x93   : > { %v1387_v32 = vsel %vm437_vm2, %v2373_v4, 0  ;;  %v2345_v60 = vcombine.low %v1003_v39, %v1013_v62  ;;  %v2346_v1 = vcombine.low %v1027_v57, %v1037_v23  ;;  %v2374_v58 = vcombine.low %v1309_v48, %v1312_v17  ;;  %v2358_v48 = vld [vmem:[%s2990_s7 + $0x48] sm:$0xe]  ;;  %v3549_v23 = vld [vmem:[%s2990_s7 + $0x58] sm:$0xf] }
  0x94   : > { %v1089_v4 = vrot.slane %v1087_v27, 4  ;;  %v1940_v39 = vrot.slane %v3517_v40, 5  ;;  %v1943_v62 = vrot.slane %v3525_v46, 5  ;;  %v1947_v57 = vrot.slane %v3537_v10, 5 }
  0x95   : > { %v1197_v11 = vsel %vm437_vm2, %v2345_v60, 0  ;;  %v1390_v24 = vsel %vm437_vm2, %v2374_v58, 0  ;;  %v3568_v60 = vld [vmem:[%s2990_s7 + $0x38] sm:$0x1] }
  0x96   : > { %v1093_v31 = vor.u32 %v1092_v33, %v1089_v4  ;;  %v1957_v30 = vrot.slane %v3568_v60, 5  ;;  %v1113_v4 = vrot.slane %v1111_v53, 4 }
  0x98   : > { %2615 = vmatpush3.bf16.xpose.msra.mxu0 %v756_v18  ;;  %2637 = vmatpush3.bf16.xpose.msra.mxu1 %v897_v22  ;;  %v1055_v18 = vor.u32 %v1054_v9, %v3432_v14  ;;  %v1317_v22 = vrot.slane %v1315_v38, 4  ;;  %v3499_v9 = vsel %vm437_vm2, %v2346_v1, 0  ;;  %v3503_v38 = vld [vmem:[%s2990_s7 + $0x50] sm:$0x1]  ;;  %v1120_v1 = vshll.u32 %v3549_v23, 16 }
  0x99   : > { %2616 = vmatprep.subr.bf16.mxu0 %v2896_v0  ;;  %2662 = vmatprep.subr.bf16.mxu1 %v2896_v0  ;;  %v1106_v44 = vshll.u32 %v3503_v38, 16 }
  0x9a   : > { %v1056_v56 = vrot.slane %v1055_v18, 4  ;;  %v1319_v50 = vsel %vm3149_vm7, %v1317_v22, %v1318_v5  ;;  %v1075_v18 = vsel %vm3016_vm4, %v3493_v16, %v3474_v3  ;;  %v3533_v22 = vsel %vm3149_vm7, %v1324_v20, %v1325_v41  ;;  %v2337_v41 = vld [vmem:[%s2990_s7 + $0x5c] sm:$0x1] }
  0x9b   : > { %v2375_v6 = vcombine.low %v1316_v15, %v1319_v50  ;;  %v1949_v3 = vrot.slane %v1947_v57, 4  ;;  %v1332_v20 = vrot.slane %v3503_v38, 5 }
  0x9c   : > { %v1061_v12 = vsel %vm3016_vm4, %v1056_v56, %v1060_v49  ;;  %v1942_v49 = vrot.slane %v1940_v39, 4  ;;  %v3560_v56 = vld [vmem:[%s2990_s7 + $0x34] sm:$0xf] }
  0x9d   : > { %v3508_v13 = vsel %vm437_vm2, %v2375_v6, 0 }
  0x9e   : > { %v3572_v54 = vsel %vm3149_vm7, %v1942_v49, %v1943_v62 }
  0x9f   : > { %2639 = vmatmul.mubr.msk.bf16.vlgmr.msra.gmra.mrb[4].mxu1 %vm437_vm2, %v2822_v35  ;;  %v1051_v35 = vsel %vm3016_vm4, %v1046_v25, %v3432_v14  ;;  %v2447_v14 = vld [vmem:[%s2990_s7 + $0x18] sm:$0xe] }
  0xa0   : > { %2617 = vmatpush3.bf16.xpose.msra.mxu0 %v759_v59  ;;  %2663 = vmatpush3.bf16.xpose.msra.mxu1 %v1384_v63  ;;  %v2357_v59 = vld [vmem:[%s2990_s7 + $0x3c] sm:$0xe]  ;;  %v3479_v63 = vld [vmem:[%s2990_s7 + $0x4c] sm:$0xf]  ;;  %v3505_v36 = vcombine.low %v1051_v35, %v1061_v12  ;;  %v2455_v5 = vrot.slane %v2447_v14, 9  ;;  %v1124_v35 = vshrl.u32 %v3549_v23, 16  ;;  %v1085_v12 = vsel %vm3016_vm4, %v3520_v34, %v3510_v29 }
  0xa1   : > { %2642 = vmatprep.subr.bf16.mxu0 %v2896_v0  ;;  %2664 = vmatprep.subr.bf16.mxu1 %v2896_v0  ;;  %v2365_v8 = vrot.slane %v2357_v59, 9  ;;  %v1100_v21 = vshrl.u32 %v3479_v63, 16  ;;  %v1329_v17 = vrot.slane %v3479_v63, 5  ;;  %v1114_v59 = vshll.u32 %v2335_v19, 16  ;;  %v3603_v29 = vld [vmem:[%s2990_s7 + $0x40] sm:$0xf] }
  0xa2   : > { %2678 = vmatprep.mubr.msk.bf16.mxu1 %vm2897_vm0, %v2896_v0  ;;  %v3553_v25 = vsel %vm3149_vm7, %v2455_v5, %v1940_v39  ;;  %v1203_v38 = vsel %vm437_vm2, %v3505_v36, 0  ;;  %v1126_v34 = vrot.slane %v1124_v35, 4  ;;  %v1961_v5 = vrot.slane %v3603_v29, 5  ;;  %v3622_v39 = vld [vmem:[%s2990_s7 + $0x44] sm:$0x1] }
  0xa3   : > { %v3514_v37 = vsel %vm3149_vm7, %v2365_v8, %v1322_v61  ;;  %v1102_v45 = vrot.slane %v1100_v21, 4  ;;  %v2457_v61 = vrot.slane %v2449_v28, 9  ;;  %v2466_v58 = vcombine.low %v3553_v25, %v3572_v54 }
  0xa4   : > { %v2376_v2 = vcombine.low %v3514_v37, %v3533_v22  ;;  %v2366_v21 = vrot.slane %v2358_v48, 9  ;;  %v1331_v16 = vrot.slane %v1329_v17, 4  ;;  %v1116_v33 = vrot.slane %v1114_v59, 5 }
  0xa5   : > { %v2348_v22 = vcombine.low %v1075_v18, %v1085_v12  ;;  %v1336_v36 = vrot.slane %v3549_v23, 5  ;;  %v1963_v18 = vrot.slane %v1961_v5, 4  ;;  %v1130_v23 = vshll.u32 %v2337_v41, 16  ;;  %v2411_v12 = vld [vmem:[%s2990_s7 + $0x18] sm:$0xf] }
  0xa6   : > { %v1396_v19 = vsel %vm437_vm2, %v2376_v2, 0  ;;  %v1333_v48 = vsel %vm3149_vm7, %v1331_v16, %v1332_v20  ;;  %v3651_v2 = vld [vmem:[%s2990_s7 + $0x4c] sm:$0xf]  ;;  %v3656_v16 = vld [vmem:[%s2990_s7 + $0x50] sm:$0x1] }
  0xa7   : > { %2619 = vmatmul.mubr.msk.bf16.vlgmr.msra.gmra.mrb[4].mxu0 %vm437_vm2, %v2821_v47  ;;  %v3543_v47 = vld [vmem:[%s2990_s7 + $0x2c] sm:$0x1]  ;;  %v1338_v53 = vrot.slane %v1336_v36, 4  ;;  %v1968_v20 = vrot.slane %v3651_v2, 5 }
  0xa8   : > { %2643 = vmatpush3.bf16.xpose.msra.mxu0 %v1194_v55  ;;  %2665 = vmatpush3.bf16.xpose.msra.mxu1 %v1387_v32  ;;  %v1096_v55 = vshll.u32 %v3479_v63, 16  ;;  %v2456_v32 = vrot.slane %v2448_v42, 9  ;;  %v1950_v15 = vrot.slane %v3543_v47, 5  ;;  %v1954_v63 = vrot.slane %v3560_v56, 5 }
  0xa9   : > { %2644 = vmatprep.subr.bf16.mxu0 %v2896_v0  ;;  %2666 = vmatprep.subr.bf16.mxu1 %v2896_v0  ;;  %v3611_v42 = vrot.slane %v1120_v1, 5  ;;  %v1206_v1 = vsel %vm437_vm2, %v2348_v22, 0  ;;  %v1970_v22 = vrot.slane %v1968_v20, 4 }
  0xaa   : > { %2658 = vmatprep.mubr.msk.bf16.mxu0 %vm2897_vm0, %v2896_v0  ;;  %v3522_v43 = vrot.slane %v1096_v55, 5  ;;  %v3564_v50 = vsel %vm3149_vm7, %v2456_v32, %v1947_v57  ;;  %v3580_v27 = vsel %vm3149_vm7, %v1949_v3, %v1950_v15  ;;  %v3588_v7 = vsel %vm3149_vm7, %v2457_v61, %v1954_v63  ;;  %v3646_v61 = vld [vmem:[%s2990_s7 + $0x64] sm:$0xf] }
  0xab   : > { %v2467_v6 = vcombine.low %v3564_v50, %v3580_v27  ;;  %v1956_v8 = vrot.slane %v1954_v63, 4  ;;  %v1108_v55 = vrot.slane %v1106_v44, 5  ;;  %v1964_v32 = vrot.slane %v3622_v39, 5  ;;  %v2097_v50 = vld [vmem:[%s3983_s2 + $0x8] sm:$0xf] }
  0xac   : > { %v1103_v52 = vor.u32 %v1102_v45, %v3522_v43  ;;  %v2359_v45 = vld [vmem:[%s2990_s7 + $0x54] sm:$0xe]  ;;  %v1127_v49 = vor.u32 %v1126_v34, %v3611_v42  ;;  %v1339_v3 = vrot.slane %v2337_v41, 5 }
  0xad   : > { %v3600_v14 = vsel %vm3149_vm7, %v1956_v8, %v1957_v30  ;;  %v2367_v15 = vrot.slane %v2359_v45, 9  ;;  %v1132_v8 = vrot.slane %v1130_v23, 5  ;;  %v1148_v45 = vshrl.u32 %v3646_v61, 16  ;;  %v2340_v23 = vld [vmem:[%s2990_s7 + $0x68] sm:$0x1] }
  0xae   : > { %v2468_v37 = vcombine.low %v3588_v7, %v3600_v14  ;;  %v1340_v41 = vsel %vm3149_vm7, %v1338_v53, %v1339_v3 }
  0xaf   : > { %v1150_v53 = vrot.slane %v1148_v45, 4 }
  0xb0   : > { %2645 = vmatpush3.bf16.xpose.msra.mxu0 %v1197_v11  ;;  %2667 = vmatpush3.bf16.xpose.msra.mxu1 %v1390_v24  ;;  %v1094_v11 = vrot.slane %v1093_v31, 4  ;;  %v1104_v24 = vrot.slane %v1103_v52, 4  ;;  %v2338_v31 = vld [vmem:[%s2990_s7 + $0x60] sm:$0xf]  ;;  %v3641_v52 = vsel %vm3149_vm7, %v1963_v18, %v1964_v32 }
  0xb1   : > { %2646 = vmatprep.subr.bf16.mxu0 %v2896_v0  ;;  %2668 = vmatprep.subr.bf16.mxu1 %v2896_v0  ;;  %v1135_v28 = vshrl.u32 %v2338_v31, 16  ;;  %v1138_v63 = vshll.u32 %v2338_v31, 16  ;;  %v1622_v31 = vshll.u32 %v3517_v40, 16 }
  0xb2   : > { %v1099_v62 = vsel %vm3016_vm4, %v1094_v11, %v3522_v43  ;;  %v1109_v57 = vsel %vm3016_vm4, %v1104_v24, %v1108_v55  ;;  %v1337_v11 = vsel %vm3149_vm7, %v2367_v15, %v1336_v36  ;;  %v1343_v36 = vrot.slane %v3646_v61, 5 }
  0xb3   : > { %v2349_v30 = vcombine.low %v1099_v62, %v1109_v57  ;;  %v1137_v24 = vrot.slane %v1135_v28, 4  ;;  %v1140_v34 = vrot.slane %v1138_v63, 5  ;;  %v1616_v62 = vshll.u32 %v2411_v12, 16 }
  0xb4   : > { %v1345_v28 = vrot.slane %v1343_v36, 4 }
  0xb8   : > { %2647 = vmatpush3.bf16.xpose.msra.mxu0 %v3499_v9  ;;  %2669 = vmatpush3.bf16.xpose.msra.mxu1 %v3508_v13  ;;  %v1330_v9 = vsel %vm3149_vm7, %v2366_v21, %v1329_v17  ;;  %v2450_v13 = vld [vmem:[%s2990_s7 + $0x3c] sm:$0xe]  ;;  %v1117_v17 = vor.u32 %v1116_v33, %v1113_v4  ;;  %v1128_v21 = vrot.slane %v1127_v49, 4  ;;  %v1144_v4 = vshll.u32 %v3646_v61, 16  ;;  %v2451_v33 = vld [vmem:[%s2990_s7 + $0x48] sm:$0xe] }
  0xb9   : > { %2648 = vmatprep.subr.bf16.mxu0 %v2896_v0  ;;  %2670 = vmatprep.subr.bf16.mxu1 %v2896_v0  ;;  %v2458_v44 = vrot.slane %v2450_v13, 9  ;;  %v2377_v35 = vcombine.low %v1330_v9, %v1333_v48  ;;  %v2360_v9 = vld [vmem:[%s2990_s7 + $0x60] sm:$0xe]  ;;  %v1613_v13 = vshrl.u32 %v2411_v12, 16  ;;  %v1141_v49 = vor.u32 %v1140_v34, %v1137_v24  ;;  %v3692_v12 = vld [vmem:[%s2990_s7 + $0x58] sm:$0xf] }
  0xba   : > { %v1118_v55 = vrot.slane %v1117_v17, 4  ;;  %v1133_v48 = vsel %vm3016_vm4, %v1128_v21, %v1132_v8  ;;  %v2378_v17 = vcombine.low %v1337_v11, %v1340_v41  ;;  %v3688_v15 = vrot.slane %v1144_v4, 5  ;;  %v3698_v11 = vld [vmem:[%s2990_s7 + $0x5c] sm:$0x1] }
  0xbb   : > { %v3637_v43 = vsel %vm3149_vm7, %v2458_v44, %v1961_v5  ;;  %v2459_v5 = vrot.slane %v2451_v33, 9  ;;  %v1626_v44 = vshrl.u32 %v3517_v40, 16  ;;  %v2368_v3 = vrot.slane %v2360_v9, 9  ;;  %v2452_v33 = vld [vmem:[%s2990_s7 + $0x54] sm:$0xe] }
  0xbc   : > { %v2469_v59 = vcombine.low %v3637_v43, %v3641_v52  ;;  %v1123_v57 = vsel %vm3016_vm4, %v1118_v55, %v3611_v42  ;;  %v1346_v61 = vrot.slane %v2340_v23, 5  ;;  %v1615_v63 = vrot.slane %v1613_v13, 4  ;;  %v2414_v42 = vld [vmem:[%s2990_s7 + $0x24] sm:$0xf] }
  0xbd   : > { %v3674_v18 = vsel %vm3149_vm7, %v2459_v5, %v1968_v20  ;;  %v1209_v8 = vsel %vm437_vm2, %v2349_v30, 0  ;;  %v3695_v55 = vrot.slane %v1622_v31, 5  ;;  %v1628_v21 = vrot.slane %v1626_v44, 4 }
  0xbe   : > { %v1975_v20 = vrot.slane %v3692_v12, 5  ;;  %v2350_v41 = vcombine.low %v1123_v57, %v1133_v48  ;;  %v1402_v24 = vsel %vm437_vm2, %v2378_v17, 0  ;;  %v1154_v4 = vshll.u32 %v2340_v23, 16 }
  0xbf   : > { %v1142_v30 = vrot.slane %v1141_v49, 4  ;;  %v2460_v34 = vrot.slane %v2452_v33, 9  ;;  %v1344_v5 = vsel %vm3149_vm7, %v2368_v3, %v1343_v36  ;;  %v1632_v9 = vshll.u32 %v3525_v46, 16  ;;  %v2453_v33 = vld [vmem:[%s2990_s7 + $0x60] sm:$0xe] }
  0xc0   : > { %2649 = vmatpush3.bf16.xpose.msra.mxu0 %v1203_v38  ;;  %2671 = vmatpush3.bf16.xpose.msra.mxu1 %v1396_v19  ;;  %v1971_v38 = vrot.slane %v3656_v16, 5  ;;  %v1399_v19 = vsel %vm437_vm2, %v2377_v35, 0  ;;  %v1618_v35 = vrot.slane %v1616_v62, 5  ;;  %v1977_v45 = vrot.slane %v1975_v20, 4 }
  0xc1   : > { %2650 = vmatprep.subr.bf16.mxu0 %v2896_v0  ;;  %2672 = vmatprep.subr.bf16.mxu1 %v2896_v0  ;;  %v1629_v13 = vor.u32 %v1628_v21, %v3695_v55  ;;  %v1637_v62 = vshrl.u32 %v2414_v42, 16  ;;  %v3715_v31 = vsel %vm3149_vm7, %v2460_v34, %v1975_v20  ;;  %v1640_v36 = vshll.u32 %v2414_v42, 16  ;;  %v3734_v21 = vld [vmem:[%s2990_s7 + $0x68] sm:$0x1] }
  0xc2   : > { %v3678_v32 = vsel %vm3149_vm7, %v1970_v22, %v1971_v38  ;;  %v1151_v38 = vor.u32 %v1150_v53, %v3688_v15  ;;  %v1347_v22 = vsel %vm3149_vm7, %v1345_v28, %v1346_v61  ;;  %v1646_v57 = vshll.u32 %v3537_v10, 16  ;;  %v2417_v61 = vld [vmem:[%s2990_s7 + $0x30] sm:$0xf] }
  0xc3   : > { %v2470_v40 = vcombine.low %v3674_v18, %v3678_v32  ;;  %v1650_v48 = vshrl.u32 %v3537_v10, 16  ;;  %v1212_v17 = vsel %vm437_vm2, %v2350_v41, 0  ;;  %v1156_v23 = vrot.slane %v1154_v4, 5 }
  0xc4   : > { %v1147_v49 = vsel %vm3016_vm4, %v1142_v30, %v3688_v15  ;;  %v1152_v53 = vrot.slane %v1151_v38, 4  ;;  %v2379_v3 = vcombine.low %v1344_v5, %v1347_v22  ;;  %v1634_v28 = vrot.slane %v1632_v9, 5 }
  0xc5   : > { %v1639_v42 = vrot.slane %v1637_v62, 4  ;;  %v1642_v15 = vrot.slane %v1640_v36, 5  ;;  %v3739_v41 = vrot.slane %v1646_v57, 5  ;;  %v1652_v4 = vrot.slane %v1650_v48, 4 }
  0xc6   : > { %v2461_v30 = vrot.slane %v2453_v33, 9  ;;  %v1157_v34 = vsel %vm3016_vm4, %v1152_v53, %v1156_v23  ;;  %v1670_v5 = vshll.u32 %v3560_v56, 16  ;;  %v1674_v22 = vshrl.u32 %v3560_v56, 16 }
  0xc7   : > { %v1656_v9 = vshll.u32 %v3543_v47, 16  ;;  %v1643_v57 = vor.u32 %v1642_v15, %v1639_v42  ;;  %v1653_v56 = vor.u32 %v1652_v4, %v3739_v41  ;;  %v1680_v33 = vshll.u32 %v3568_v60, 16 }
  0xc8   : > { %2651 = vmatpush3.bf16.xpose.msra.mxu0 %v1206_v1  ;;  %2673 = vmatpush3.bf16.xpose.msra.mxu1 %v1399_v19  ;;  %v1978_v1 = vrot.slane %v3698_v11, 5  ;;  %v1619_v19 = vor.u32 %v1618_v35, %v1615_v63  ;;  %v3731_v63 = vld [vmem:[%s2990_s7 + $0x64] sm:$0xf]  ;;  %v1630_v35 = vrot.slane %v1629_v13, 4  ;;  %v3765_v23 = vrot.slane %v1670_v5, 5 }
  0xc9   : > { %2652 = vmatprep.subr.bf16.mxu0 %v2896_v0  ;;  %2674 = vmatprep.subr.bf16.mxu1 %v2896_v0  ;;  %v1982_v20 = vrot.slane %v3731_v63, 5  ;;  %v1676_v53 = vrot.slane %v1674_v22, 4  ;;  %v1644_v15 = vrot.slane %v1643_v57, 4  ;;  %v1654_v4 = vrot.slane %v1653_v56, 4 }
  0xca   : > { %v3719_v44 = vsel %vm3149_vm7, %v1977_v45, %v1978_v1  ;;  %v1620_v10 = vrot.slane %v1619_v19, 4  ;;  %v1985_v1 = vrot.slane %v3734_v21, 5  ;;  %v1405_v45 = vsel %vm437_vm2, %v2379_v3, 0  ;;  %v2420_v3 = vld [vmem:[%s2990_s7 + $0x3c] sm:$0xf] }
  0xcb   : > { %v2471_v46 = vcombine.low %v3715_v31, %v3719_v44  ;;  %v1984_v38 = vrot.slane %v1982_v20, 4  ;;  %v3754_v13 = vsel %vm3149_vm7, %v2461_v30, %v1982_v20  ;;  %v1635_v36 = vsel %vm3016_vm4, %v1630_v35, %v1634_v28  ;;  %v3772_v35 = vld [vmem:[%s2990_s7 + $0x74] sm:$0x1] }
  0xcc   : > { %v1625_v19 = vsel %vm3016_vm4, %v1620_v10, %v3695_v55  ;;  %v2351_v10 = vcombine.low %v1147_v49, %v1157_v34  ;;  %v1658_v28 = vrot.slane %v1656_v9, 5  ;;  %v1685_v49 = vshrl.u32 %v2420_v3, 16 }
  0xcd   : > { %v3758_v62 = vsel %vm3149_vm7, %v1984_v38, %v1985_v1  ;;  %v2438_v20 = vcombine.low %v1625_v19, %v1635_v36  ;;  %v2454_v1 = vld [vmem:[%s2990_s7 + $0x6c] sm:$0xe]  ;;  %v1677_v34 = vor.u32 %v1676_v53, %v3765_v23  ;;  %v1694_v5 = vshll.u32 %v3603_v29, 16 }
  0xce   : > { %v2472_v55 = vcombine.low %v3754_v13, %v3758_v62  ;;  %v2825_v38 = vld [vmem:[%s3982_s1 + $0x28] sm:$0x3f]   ;;  %v1698_v22 = vshrl.u32 %v3603_v29, 16  ;;  %v1215_v9 = vsel %vm437_vm2, %v2351_v10, 0  ;;  %v1649_v57 = vsel %vm3016_vm4, %v1644_v15, %v3739_v41  ;;  %v2824_v41 = vld [vmem:[%s2990_s7 + $0x18] sm:$0xff]  }
  0xcf   : > { %v1840_v36 = vsel %vm437_vm2, %v2438_v20, 0  ;;  %v1659_v56 = vsel %vm3016_vm4, %v1654_v4, %v1658_v28  ;;  %v1682_v51 = vrot.slane %v1680_v33, 5  ;;  %v1678_v53 = vrot.slane %v1677_v34, 4  ;;  %v2423_v15 = vld [vmem:[%s2990_s7 + $0x48] sm:$0xf] }
  0xd0   : > { %2653 = vmatpush3.bf16.xpose.msra.mxu0 %v1209_v8  ;;  %2675 = vmatpush3.bf16.xpose.msra.mxu1 %v1402_v24  ;;  %v1661_v8 = vshrl.u32 %v2417_v61, 16  ;;  %v1664_v24 = vshll.u32 %v2417_v61, 16  ;;  %v3769_v61 = vld [vmem:[%s2990_s7 + $0x70] sm:$0xf]  ;;  %v1696_v10 = vrot.slane %v1694_v5, 5  ;;  %v1700_v20 = vrot.slane %v1698_v22, 4 }
  0xd1   : > { %2654 = vmatprep.subr.bf16.mxu0 %v2896_v0  ;;  %2676 = vmatprep.subr.bf16.mxu1 %v2896_v0  ;;  %v1989_v42 = vrot.slane %v3769_v61, 5  ;;  %v1704_v28 = vshll.u32 %v3622_v39, 16  ;;  %v2823_v4 = vld [vmem:[%s3982_s1 + $0x20] sm:$0x3f]   ;;  %v1718_v39 = vshll.u32 %v3651_v2, 16  ;;  %v2039_v7 = vsel %vm437_vm2, %v2469_v59, 0 }
  0xd2   : > { %v1663_v48 = vrot.slane %v1661_v8, 4  ;;  %v1666_v47 = vrot.slane %v1664_v24, 5  ;;  %v1992_v8 = vrot.slane %v3772_v35, 5  ;;  %v2462_v24 = vrot.slane %v2454_v1, 9  ;;  %v2835_v59 = vld [vmem:[%s3982_s1 + $0x40] sm:$0x3f]  }
  0xd3   : > { %v1991_v30 = vrot.slane %v1989_v42, 4  ;;  %v1683_v1 = vsel %vm3016_vm4, %v1678_v53, %v1682_v51  ;;  %v1728_v53 = vshll.u32 %v3656_v16, 16  ;;  %v2042_v14 = vsel %vm437_vm2, %v2470_v40, 0 }
  0xd4   : > { %v3788_v60 = vsel %vm3149_vm7, %v2462_v24, %v1989_v42  ;;  %v2439_v42 = vcombine.low %v1649_v57, %v1659_v56  ;;  %v1712_v24 = vshll.u32 %v2423_v15, 16  ;;  %v1720_v56 = vrot.slane %v1718_v39, 5 }
  0xd5   : > { %v3792_v19 = vsel %vm3149_vm7, %v1991_v30, %v1992_v8  ;;  %v1722_v30 = vshrl.u32 %v3651_v2, 16  ;;  %v2426_v2 = vld [vmem:[%s2990_s7 + $0x54] sm:$0xf]  ;;  %v2048_v43 = vsel %vm437_vm2, %v2472_v55, 0 }
  0xd6   : > { %v2473_v29 = vcombine.low %v3788_v60, %v3792_v19  ;;  %v1843_v34 = vsel %vm437_vm2, %v2439_v42, 0  ;;  %v1714_v57 = vrot.slane %v1712_v24, 5 }
  0xd8   : > { %2655 = vmatpush3.bf16.xpose.msra.mxu0 %v1212_v17  ;;  %2677 = vmatpush3.bf16.xpose.msra.mxu1 %v1405_v45  ;;  %v1667_v17 = vor.u32 %v1666_v47, %v1663_v48  ;;  %v1688_v45 = vshll.u32 %v2420_v3, 16  ;;  %v1687_v47 = vrot.slane %v1685_v49, 4  ;;  %v1709_v49 = vshrl.u32 %v2423_v15, 16 }
  0xd9   : > { %2656 = vmatprep.subr.bf16.mxu0 %v2896_v0  ;;  %2702 = vmatprep.subr.bf16.mxu1 %v2896_v0  ;;  %v1733_v15 = vshrl.u32 %v2426_v2, 16  ;;  %v2051_v52 = vsel %vm437_vm2, %v2473_v29, 0 }
  0xda   : > { %v1668_v48 = vrot.slane %v1667_v17, 4  ;;  %v1690_v3 = vrot.slane %v1688_v45, 5  ;;  %v1701_v17 = vor.u32 %v1700_v20, %v1696_v10  ;;  %v2826_v45 = vld [vmem:[%s2990_s7 + $0x24] sm:$0xff]  }
  0xdb   : > { %v1525_v51 = vsel %vm437_vm2, %v2826_v45, 0 }
  0xdc   : > { %v1673_v33 = vsel %vm3016_vm4, %v1668_v48, %v3765_v23  ;;  %v1691_v8 = vor.u32 %v1690_v3, %v1687_v47  ;;  %v1702_v22 = vrot.slane %v1701_v17, 4  ;;  %v1724_v48 = vrot.slane %v1722_v30, 4 }
  0xdd   : > { %v2440_v23 = vcombine.low %v1673_v33, %v1683_v1  ;;  %v1746_v33 = vshrl.u32 %v3692_v12, 16  ;;  %v2827_v1 = vld [vmem:[%s2990_s7 + $0x30] sm:$0xff]  }
  0xde   : > { %v1692_v5 = vrot.slane %v1691_v8, 4  ;;  %v1725_v42 = vor.u32 %v1724_v48, %v1720_v56  ;;  %v1766_v48 = vshll.u32 %v3731_v63, 16 }
  0xdf   : > { %2679 = vmatmul.mubr.msk.bf16.vlgmr.msra.gmra.mrb[8].mxu1 %vm437_vm2, %v2825_v38  ;;  %v1522_v38 = vsel %vm437_vm2, %v2824_v41, 0  ;;  %v1846_v47 = vsel %vm437_vm2, %v2440_v23, 0  ;;  %v1748_v30 = vrot.slane %v1746_v33, 4 }
  0xe0   : > { %2657 = vmatpush3.bf16.xpose.msra.mxu0 %v1215_v9  ;;  %2703 = vmatpush3.bf16.xpose.msra.mxu1 %v1840_v36  ;;  %v1706_v9 = vrot.slane %v1704_v28, 5  ;;  %v1711_v36 = vrot.slane %v1709_v49, 4  ;;  %v1697_v3 = vsel %vm3016_vm4, %v1692_v5, %v1696_v10  ;;  %v1736_v28 = vshll.u32 %v2426_v2, 16 }
  0xe1   : > { %2682 = vmatprep.subr.bf16.mxu0 %v2896_v0  ;;  %2704 = vmatprep.subr.bf16.mxu1 %v2896_v0  ;;  %v1726_v17 = vrot.slane %v1725_v42, 4  ;;  %v1730_v49 = vrot.slane %v1728_v53, 5  ;;  %v1735_v10 = vrot.slane %v1733_v15, 4  ;;  %v1752_v5 = vshll.u32 %v3698_v11, 16  ;;  %v2432_v15 = vld [vmem:[%s2990_s7 + $0x6c] sm:$0xf] }
  0xe2   : > { %2718 = vmatprep.mubr.msk.bf16.mxu1 %vm2897_vm0, %v2896_v0  ;;  %v1707_v20 = vsel %vm3016_vm4, %v1702_v22, %v1706_v9  ;;  %v1715_v41 = vor.u32 %v1714_v57, %v1711_v36  ;;  %v1738_v24 = vrot.slane %v1736_v28, 5  ;;  %v1770_v2 = vshrl.u32 %v3731_v63, 16 }
  0xe3   : > { %v2441_v8 = vcombine.low %v1697_v3, %v1707_v20  ;;  %v1731_v23 = vsel %vm3016_vm4, %v1726_v17, %v1730_v49  ;;  %v1754_v53 = vrot.slane %v1752_v5, 5  ;;  %v1784_v49 = vshll.u32 %v2432_v15, 16 }
  0xe4   : > { %v1716_v16 = vrot.slane %v1715_v41, 4  ;;  %v1739_v22 = vor.u32 %v1738_v24, %v1735_v10  ;;  %v1768_v41 = vrot.slane %v1766_v48, 5  ;;  %v1772_v42 = vrot.slane %v1770_v2, 4 }
  0xe5   : > { %v1790_v10 = vshll.u32 %v3769_v61, 16  ;;  %v1794_v24 = vshrl.u32 %v3769_v61, 16 }
  0xe6   : > { %v1721_v45 = vsel %vm3016_vm4, %v1716_v16, %v1720_v56  ;;  %v1740_v56 = vrot.slane %v1739_v22, 4  ;;  %v1781_v16 = vshrl.u32 %v2432_v15, 16  ;;  %v1773_v17 = vor.u32 %v1772_v42, %v1768_v41 }
  0xe7   : > { %2659 = vmatmul.mubr.msk.bf16.vlgmr.msra.gmra.mrb[8].mxu0 %vm437_vm2, %v2823_v4  ;;  %v1742_v4 = vshll.u32 %v3692_v12, 16  ;;  %v1849_v12 = vsel %vm437_vm2, %v2441_v8, 0  ;;  %v1792_v5 = vrot.slane %v1790_v10, 5  ;;  %v1796_v61 = vrot.slane %v1794_v24, 4 }
  0xe8   : > { %2683 = vmatpush3.bf16.xpose.msra.mxu0 %v1522_v38  ;;  %2705 = vmatpush3.bf16.xpose.msra.mxu1 %v1843_v34  ;;  %v2429_v38 = vld [vmem:[%s2990_s7 + $0x60] sm:$0xf]  ;;  %v1528_v34 = vsel %vm437_vm2, %v2827_v1, 0  ;;  %v2898_v22 = vmov 0  }
  0xe9   : > { %2684 = vmatprep.subr.bf16.mxu0 %v2896_v0  ;;  %2706 = vmatprep.subr.bf16.mxu1 %v2896_v0  ;;  %v1744_v39 = vrot.slane %v1742_v4, 5  ;;  %v1757_v36 = vshrl.u32 %v2429_v38, 16  ;;  %v1760_v57 = vshll.u32 %v2429_v38, 16  ;;  %v1776_v4 = vshll.u32 %v3734_v21, 16  ;;  %v2096_v21 = vld [vmem:[%s3983_s2] sm:$0xff] }
  0xea   : > { %2698 = vmatprep.mubr.msk.bf16.mxu0 %vm2897_vm0, %v2896_v0  ;;  %2802 = vset.pattern.permute.xlu0 %v2898_v22 }
  0xeb   : > { %v1749_v9 = vor.u32 %v1748_v30, %v1744_v39  ;;  %v1759_v3 = vrot.slane %v1757_v36, 4  ;;  %v1762_v20 = vrot.slane %v1760_v57, 5  ;;  %v1745_v33 = vsel %vm3016_vm4, %v1740_v56, %v1744_v39  ;;  %v2829_v39 = vld [vmem:[%s2990_s7 + $0x48] sm:$0xff]   ;;  %2100 = vperm.xlu0 %2802, %v2096_v21  }
  0xec   : > { %v1800_v57 = vshll.u32 %v3772_v35, 16 }
  0xed   : > { %v1750_v11 = vrot.slane %v1749_v9, 4  ;;  %v1763_v8 = vor.u32 %v1762_v20, %v1759_v3  ;;  %v1534_v9 = vsel %vm437_vm2, %v2829_v39, 0 }
  0xee   : > { %v1802_v35 = vrot.slane %v1800_v57, 5 }
  0xef   : > { %v1755_v1 = vsel %vm3016_vm4, %v1750_v11, %v1754_v53  ;;  %v1764_v38 = vrot.slane %v1763_v8, 4  ;;  %v2830_v53 = vld [vmem:[%s2990_s7 + $0x54] sm:$0xff]   ;;  %2105 = vperm.xlu0 %2802, %v2097_v50  }
  0xf0   : > { %2685 = vmatpush3.bf16.xpose.msra.mxu0 %v1525_v51  ;;  %2707 = vmatpush3.bf16.xpose.msra.mxu1 %v1846_v47  ;;  %v2828_v51 = vld [vmem:[%s2990_s7 + $0x3c] sm:$0xff]   ;;  %v2442_v47 = vcombine.low %v1721_v45, %v1731_v23  ;;  %v2443_v30 = vcombine.low %v1745_v33, %v1755_v1  ;;  %v1774_v45 = vrot.slane %v1773_v17, 4  ;;  %v1786_v23 = vrot.slane %v1784_v49, 5  ;;  %v2832_v1 = vld [vmem:[%s2990_s7 + $0x6c] sm:$0xff]  }
  0xf1   : > { %2686 = vmatprep.subr.bf16.mxu0 %v2896_v0  ;;  %2708 = vmatprep.subr.bf16.mxu1 %v2896_v0  ;;  %v1531_v28 = vsel %vm437_vm2, %v2828_v51, 0  ;;  %v1769_v48 = vsel %vm3016_vm4, %v1764_v38, %v1768_v41  ;;  %v1537_v20 = vsel %vm437_vm2, %v2830_v53, 0  ;;  %v1543_v8 = vsel %vm437_vm2, %v2832_v1, 0 }
  0xf2   : > { %v1852_v63 = vsel %vm437_vm2, %v2442_v47, 0  ;;  %v1855_v36 = vsel %vm437_vm2, %v2443_v30, 0  ;;  %v1797_v47 = vor.u32 %v1796_v61, %v1792_v5  ;;  %v2030_v17 = vsel %vm437_vm2, %v2466_v58, 0 }
  0xf3   : > { %v2033_v49 = vsel %vm437_vm2, %v2467_v6, 0  ;;  %v2036_v58 = vsel %vm437_vm2, %v2468_v37, 0  ;;  %v2045_v37 = vsel %vm437_vm2, %v2471_v46, 0 }
  0xf4   : > { %v1798_v3 = vrot.slane %v1797_v47, 4 }
  0xf6   : > { %v1803_v15 = vsel %vm3016_vm4, %v1798_v3, %v1802_v35 }
  0xf8   : > { %2687 = vmatpush3.bf16.xpose.msra.mxu0 %v1528_v34  ;;  %2709 = vmatpush3.bf16.xpose.msra.mxu1 %v1849_v12  ;;  %v1778_v34 = vrot.slane %v1776_v4, 5  ;;  %v1783_v12 = vrot.slane %v1781_v16, 4  ;;  %v2833_v16 = vld [vmem:[%s3982_s1 + $0x30] sm:$0x3f]  }
  0xf9   : > { %2688 = vmatprep.subr.bf16.mxu0 %v2896_v0  ;;  %2710 = vmatprep.subr.bf16.mxu1 %v2896_v0 }
  0xfa   : > { %v1779_v2 = vsel %vm3016_vm4, %v1774_v45, %v1778_v34  ;;  %v1787_v51 = vor.u32 %v1786_v23, %v1783_v12 }
  0xfb   : > { %v2444_v56 = vcombine.low %v1769_v48, %v1779_v2 }
  0xfc   : > { %v1788_v11 = vrot.slane %v1787_v51, 4 }
  0xfd   : > { %v1858_v41 = vsel %vm437_vm2, %v2444_v56, 0 }
  0xfe   : > { %v1793_v42 = vsel %vm3016_vm4, %v1788_v11, %v1792_v5 }
 0x100   : > { %2689 = vmatpush3.bf16.xpose.msra.mxu0 %v1531_v28  ;;  %2711 = vmatpush3.bf16.xpose.msra.mxu1 %v1852_v63  ;;  %v2831_v28 = vld [vmem:[%s2990_s7 + $0x60] sm:$0xff]   ;;  %v2445_v63 = vcombine.low %v1793_v42, %v1803_v15 }
 0x101   : > { %2690 = vmatprep.subr.bf16.mxu0 %v2896_v0  ;;  %2712 = vmatprep.subr.bf16.mxu1 %v2896_v0  ;;  %v1540_v4 = vsel %vm437_vm2, %v2831_v28, 0 }
 0x102   : > { %v1861_v33 = vsel %vm437_vm2, %v2445_v63, 0 }
 0x108   : > { %2691 = vmatpush3.bf16.xpose.msra.mxu0 %v1534_v9  ;;  %2713 = vmatpush3.bf16.xpose.msra.mxu1 %v1855_v36 }
 0x109   : > { %2692 = vmatprep.subr.bf16.mxu0 %v2896_v0  ;;  %2714 = vmatprep.subr.bf16.mxu1 %v2896_v0 }
 0x110   : > { %2693 = vmatpush3.bf16.xpose.msra.mxu0 %v1537_v20  ;;  %2715 = vmatpush3.bf16.xpose.msra.mxu1 %v1858_v41 }
 0x111   : > { %2694 = vmatprep.subr.bf16.mxu0 %v2896_v0  ;;  %2716 = vmatprep.subr.bf16.mxu1 %v2896_v0 }
 0x118   : > { %2695 = vmatpush3.bf16.xpose.msra.mxu0 %v1540_v4  ;;  %2717 = vmatpush3.bf16.xpose.msra.mxu1 %v1861_v33 }
 0x119   : > { %2696 = vmatprep.subr.bf16.mxu0 %v2896_v0 }
 0x11f   : > { %2719 = vmatmul.mubr.msk.bf16.vlgmr.msra.gmra.mrb[12].mxu1 %vm437_vm2, %v2834_v26 }
 0x120   : > { %2697 = vmatpush3.bf16.xpose.msra.mxu0 %v1543_v8 }
 0x121   : > { %2722 = vmatprep.subr.bf16.mxu0 %v2896_v0 }
 0x127   : > { %2699 = vmatmul.mubr.msk.bf16.vlgmr.msra.gmra.mrb[12].mxu0 %vm437_vm2, %v2833_v16 }
 0x128   : > { %2723 = vmatpush3.bf16.xpose.msra.mxu0 %v2030_v17  ;;  %2738 = vmatprep.mubr.msk.bf16.mxu0 %vm2897_vm0, %v2896_v0 }
 0x129   : > { %2724 = vmatprep.subr.bf16.mxu0 %v2896_v0 }
 0x130   : > { %2725 = vmatpush3.bf16.xpose.msra.mxu0 %v2033_v49 }
 0x131   : > { %2726 = vmatprep.subr.bf16.mxu0 %v2896_v0 }
 0x132   : > { %v612_v10 = vpop.f32.mrb[0].mxu1 }
 0x133   : > { %v2600_v25 = vpop.f32.mrb[1].mxu1 }
 0x134   : > { %v615_v54 = vpop.f32.mrb[2].mxu1 }
 0x135   : > { %v2601_v24 = vpop.f32.mrb[3].mxu1 }
 0x138   : > { %2727 = vmatpush3.bf16.xpose.msra.mxu0 %v2036_v58 }
 0x139   : > { %2728 = vmatprep.subr.bf16.mxu0 %v2896_v0 }
 0x13a   : > { %v499_v21 = vpop.f32.mrb[0].mxu0 }
 0x13b   : > { %v613_v27 = vadd.f32 %v612_v10, %v499_v21  ;;  %v2580_v6 = vpop.f32.mrb[1].mxu0 }
 0x13c   : > { %v502_v39 = vpop.f32.mrb[2].mxu0 }
 0x13d   : > { %v616_v30 = vadd.f32 %v615_v54, %v502_v39  ;;  %v2581_v38 = vpop.f32.mrb[3].mxu0 }
 0x140   : > { %2729 = vmatpush3.bf16.xpose.msra.mxu0 %v2039_v7 }
 0x141   : > { %2730 = vmatprep.subr.bf16.mxu0 %v2896_v0 }
 0x148   : > { %2731 = vmatpush3.bf16.xpose.msra.mxu0 %v2042_v14 }
 0x149   : > { %2732 = vmatprep.subr.bf16.mxu0 %v2896_v0 }
 0x150   : > { %2733 = vmatpush3.bf16.xpose.msra.mxu0 %v2045_v37 }
 0x151   : > { %2734 = vmatprep.subr.bf16.mxu0 %v2896_v0 }
 0x158   : > { %2735 = vmatpush3.bf16.xpose.msra.mxu0 %v2048_v43 }
 0x159   : > { %2736 = vmatprep.subr.bf16.mxu0 %v2896_v0 }
 0x160   : > { %2737 = vmatpush3.bf16.xpose.msra.mxu0 %v2051_v52 }
 0x167   : > { %2739 = vmatmul.mubr.msk.bf16.vlgmr.msra.gmra.mrb[16].mxu0 %vm437_vm2, %v2835_v59 }
 0x16a   : > { %v2101_v28 = vpop.permute.xlu0 %2100 }
 0x16e   : > { %v2106_v17 = vpop.permute.xlu0 %2105 }
 0x172   : > { %v933_v18 = vpop.f32.mrb[4].mxu1 }
 0x173   : > { %v2640_v32 = vpop.f32.mrb[5].mxu1 }
 0x174   : > { %v936_v40 = vpop.f32.mrb[6].mxu1 }
 0x175   : > { %v2641_v31 = vpop.f32.mrb[7].mxu1 }
 0x17a   : > { %v795_v44 = vpop.f32.mrb[4].mxu0 }
 0x17b   : > { %v802_v46 = vadd.f32 %v795_v44, %v613_v27  ;;  %v2620_v13 = vpop.f32.mrb[5].mxu0 }
 0x17c   : > { %v798_v0 = vpop.f32.mrb[6].mxu0 }
 0x17d   : > { %v803_v62 = vadd.f32 %v798_v0, %v616_v30  ;;  %v940_v55 = vadd.f32 %v933_v18, %v802_v46  ;;  %v2621_v60 = vpop.f32.mrb[7].mxu0 }
 0x17f   : > { %v941_v19 = vadd.f32 %v936_v40, %v803_v62 }
 0x1b2   : > { %v1441_v29 = vpop.f32.mrb[8].mxu1 }
 0x1b3   : > { %v2680_v34 = vpop.f32.mrb[9].mxu1 }
 0x1b4   : > { %v1444_v12 = vpop.f32.mrb[10].mxu1 }
 0x1b5   : > { %v2681_v45 = vpop.f32.mrb[11].mxu1 }
 0x1ba   : > { %v1251_v23 = vpop.f32.mrb[8].mxu0 }
 0x1bb   : > { %v1258_v5 = vadd.f32 %v1251_v23, %v940_v55  ;;  %v2660_v61 = vpop.f32.mrb[9].mxu0 }
 0x1bc   : > { %v1254_v22 = vpop.f32.mrb[10].mxu0 }
 0x1bd   : > { %v1259_v9 = vadd.f32 %v1254_v22, %v941_v19  ;;  %v1448_v36 = vadd.f32 %v1441_v29, %v1258_v5  ;;  %v2661_v57 = vpop.f32.mrb[11].mxu0 }
 0x1bf   : > { %v1449_v48 = vadd.f32 %v1444_v12, %v1259_v9 }
 0x1f2   : > { %v1897_v2 = vpop.f32.mrb[12].mxu1 }
 0x1f3   : > { %v2720_v51 = vpop.f32.mrb[13].mxu1 }
 0x1f4   : > { %v1900_v47 = vpop.f32.mrb[14].mxu1 }
 0x1f5   : > { %v2721_v53 = vpop.f32.mrb[15].mxu1 }
 0x1fa   : > { %v1579_v56 = vpop.f32.mrb[12].mxu0 }
 0x1fb   : > { %v1586_v11 = vadd.f32 %v1579_v56, %v1448_v36  ;;  %v2700_v3 = vpop.f32.mrb[13].mxu0 }
 0x1fc   : > { %v1582_v35 = vpop.f32.mrb[14].mxu0 }
 0x1fd   : > { %v1587_v20 = vadd.f32 %v1582_v35, %v1449_v48  ;;  %v1904_v41 = vadd.f32 %v1897_v2, %v1586_v11  ;;  %v2701_v42 = vpop.f32.mrb[15].mxu0 }
 0x1ff   : > { %v1905_v15 = vadd.f32 %v1900_v47, %v1587_v20 }
 0x23a   : > { %v2087_v63 = vpop.f32.mrb[16].mxu0 }
 0x23b   : > { %v2094_v4 = vadd.f32 %v2087_v63, %v1904_v41  ;;  %v2740_v33 = vpop.f32.mrb[17].mxu0 }
 0x23c   : > { %v2090_v1 = vpop.f32.mrb[18].mxu0 }
 0x23d   : > { %v2108_v26 = vadd.f32 %v2101_v28, %v2094_v4  ;;  %v2095_v8 = vadd.f32 %v2090_v1, %v1905_v15  ;;  %v2741_v16 = vpop.f32.mrb[19].mxu0 }
 0x23f   : > { %2836 = vtanh.f32 %v2108_v26  ;;  %v2109_v49 = vadd.f32 %v2106_v17, %v2095_v8 }
 0x241   : > { %2838 = vtanh.f32 %v2109_v49 }
 0x246   : > { %2120 = sbr.rel (!%p2965_p5) target bundleno = 597 (0x255), region = 36 }
 0x249   : > { %v2837_v10 = vpop.eup %2836 }
 0x24a   : > { %2112 = vst [vmem:[%s173_s26] sm:$0xff] %v2837_v10 }
 0x24b   : > { %v2839_v25 = vpop.eup %2838 }
 0x24c   : > { %2113 = vst [vmem:[%s173_s26 + $0x8] sm:$0xf] %v2839_v25 }
 0x251   : > { %v2154_v54 = vld [vmem:[%s173_s26] sm:$0xff] }
 0x252   : > { %2155 = vst [vmem:[%s2124_s12] sm:$0xff] %v2154_v54 }
 0x253   : > { %v2156_v58 = vld [vmem:[%s173_s26 + $0x8] sm:$0xff] }
 0x254   : > { %2157 = vst [vmem:[%s2124_s12 + $0x10] sm:$0xff] %v2156_v58 }
 0x255 PF: > { %s13_s18 = sadd.s32 1, %s2894_s18   ;;  %s3990_s12 = smov %s2874_s13 }
 0x256   : > { %p10_p10 = scmp.ge.s32.totalorder %s13_s18, 6   ;;  %s3991_s13 = smov %s2976_s27 }
 0x257   : > { %s3992_s14 = smov %s2886_s16  ;;  %s3993_s15 = smov %s2890_s17 }
 0x258   : > { %s3994_s16 = smov %s3997_s19  ;;  %s3995_s17 = smov %s4001_s20 }
 0x259   :  { %12 = sbr.rel (!%p10_p10) target bundleno = 4 (0x4), region = 111 }

</bundles_post_ra>
